<compile_context>
chip_gen: v5e
topology: v5e:2x2
jax: 0.10.0
libtpu: 0.0.40
codegen_flags: <defaults>
</compile_context>

<pallas_src>
import jax
import jax.numpy as jnp
import numpy as np
from jax.experimental import pallas as pl
from jax.experimental.pallas import tpu as pltpu


# ----------------------------------------------------------------------------
# Fused Pallas kernel: whole branch_2 + concat + channel_shuffle per image
# ----------------------------------------------------------------------------
def make_fused_kernel(H, W, C, act):
    c = C // 2
    HW = H * W
    P = W + 1  # flat-spatial zero pad so every 3x3 tap slice stays in-bounds

    def dw3x3(h, wt, bias, w_idx):
        """Depthwise 3x3 (stride 1, pad 1) + folded BN (scale already in wt).

        h    : (Cin, HW)   activations, spatial flattened on the lane axis
        wt   : (Cout, 9)   per-out-channel taps * BN scale (Cout = mult*Cin)
        bias : (Cout, 1)
        """
        cin = h.shape[0]
        cout = wt.shape[0]
        mult = cout // cin
        if mult > 1:
            # grouped conv channel multiplier: out channel oc reads in channel oc//mult
            h = jnp.concatenate(
                [h[oc // mult:oc // mult + 1, :] for oc in range(cout)], axis=0)
        zeros = jnp.zeros((cout, P), jnp.float32)
        zf = jnp.concatenate([zeros, h, zeros], axis=1)          # (Cout, HW+2P)
        acc = jnp.zeros((cout, HW), jnp.float32)
        for kh in range(3):
            for kw in range(3):
                dh, dw = kh - 1, kw - 1
                s = P + dh * W + dw
                tap = zf[:, s:s + HW]
                if dw == -1:                   # mask width wrap-around
                    tap = jnp.where(w_idx >= 1, tap, 0.0)
                elif dw == 1:
                    tap = jnp.where(w_idx <= W - 2, tap, 0.0)
                acc = acc + tap * wt[:, kh * 3 + kw:kh * 3 + kw + 1]
        return acc + bias

    def pw1x1(h, wt, bias):
        """1x1 conv + folded BN + activation.  h: (Cin, HW), wt: (Cout, Cin)."""
        cout, cin = wt.shape
        if cin <= 32:
            # tiny channel count -> VPU broadcast-FMAs (MXU would be wasted)
            acc = jnp.zeros((cout, HW), jnp.float32)
            for ci in range(cin):
                acc = acc + h[ci:ci + 1, :] * wt[:, ci:ci + 1]
        else:
            acc = jnp.dot(wt, h, preferred_element_type=jnp.float32)
        y = acc + bias
        if act == 'hswish':
            y = y * jnp.clip(y + 3.0, 0.0, 6.0) * (1.0 / 6.0)
        elif act == 'relu':
            y = jnp.clip(y, 0.0, 6.0)          # module uses ReLU6
        return y

    def kernel(x_ref, w0, b0, w1, b1, w2, b2, w3, b3, w4, b4, w5, b5, o_ref):
        x_img = x_ref[0]                                          # (C, HW)
        w_idx = jax.lax.broadcasted_iota(jnp.int32, (1, HW), 1) % W
        h = x_img[c:, :]                                          # x2 branch
        h = dw3x3(h, w0[...], b0[...], w_idx)
        h = pw1x1(h, w1[...], b1[...])
        h = dw3x3(h, w2[...], b2[...], w_idx)
        h = pw1x1(h, w3[...], b3[...])
        h = dw3x3(h, w4[...], b4[...], w_idx)
        h = pw1x1(h, w5[...], b5[...])
        # Fused concat([x1, branch_2]) + channel_shuffle(groups=2):
        #   out[2i] = x1[i], out[2i+1] = branch_2[i]
        for i in range(c):
            o_ref[0, 2 * i:2 * i + 1, :] = x_img[i:i + 1, :]
            o_ref[0, 2 * i + 1:2 * i + 2, :] = h[i:i + 1, :]

    return kernel


# ----------------------------------------------------------------------------
# Forward wrapper (one pallas_call, batch-parallel grid)
# ----------------------------------------------------------------------------
def shuffle_block_x_forward(x_nchw, params):
    N, C, H, W = x_nchw.shape
    assert C % 2 == 0
    HW = H * W
    act = params['activation']

    # Fold BN scale into the conv weights; repack into kernel layouts.
    flat = []
    for layer in params['branch_2']:
        s = layer['scale'].astype(jnp.float32)
        b = layer['bias'].astype(jnp.float32)
        if layer['type'] == 'g3':
            cout = layer['w'].shape[-1]
            wf = jnp.transpose(layer['w'], (2, 0, 1)).reshape(cout, 9) * s[:, None]
        else:
            cout = layer['w'].shape[-1]
            wf = layer['w'].T * s[:, None]                        # (Cout, Cin)
        flat += [wf.astype(jnp.float32), b.reshape(cout, 1)]

    x_flat = x_nchw.reshape(N, C, HW)                             # free minor-dim merge

    in_specs = [pl.BlockSpec((1, C, HW), lambda n: (n, 0, 0))]
    for a in flat:
        in_specs.append(pl.BlockSpec(a.shape, lambda n: (0, 0)))

    out = pl.pallas_call(
        make_fused_kernel(H, W, C, act),
        out_shape=jax.ShapeDtypeStruct((N, C, HW), jnp.float32),
        grid=(N,),
        in_specs=in_specs,
        out_specs=pl.BlockSpec((1, C, HW), lambda n: (n, 0, 0)),
        compiler_params=pltpu.CompilerParams(
            dimension_semantics=("parallel",),        # megacore on v7x
            vmem_limit_bytes=32 * 1024 * 1024),       # explicit, fits v7x's 64 MiB
    )(x_flat, *flat)
    return out.reshape(N, C, H, W)


# ----------------------------------------------------------------------------
# Deterministic parameter init (synthetic; BN folded to scale/bias)
# ----------------------------------------------------------------------------
def _fold_bn(key, cout):
    k1, k2, k3, k4 = jax.random.split(key, 4)
    gamma = 1.0 + 0.1 * jax.random.normal(k1, (cout,), jnp.float32)
    beta = 0.1 * jax.random.normal(k2, (cout,), jnp.float32)
    mean = 0.1 * jax.random.normal(k3, (cout,), jnp.float32)
    var = 0.5 + jax.random.uniform(k4, (cout,), jnp.float32)
    scale = gamma / jnp.sqrt(var + 1e-5)
    bias = beta - mean * scale
    return scale, bias


def init_shuffle_block_params(key, in_channels, out_channels, activation='hswish'):
    assert in_channels == out_channels, "stride=1 ShuffleBlockX requires in == out"
    boc = out_channels // 2
    # branch_2 layer plan (stride=1): (type, cin, cout)
    cfgs = [('g3', boc, in_channels), ('pw', in_channels, boc),
            ('g3', boc, boc), ('pw', boc, boc),
            ('g3', boc, boc), ('pw', boc, boc)]
    layers = []
    for typ, cin, cout in cfgs:
        key, kw_, kb = jax.random.split(key, 3)
        scale, bias = _fold_bn(kb, cout)
        if typ == 'g3':
            # (3, 3, Cout) == PyTorch weight[oc, 0, kh, kw] transposed
            w = 0.2 * jax.random.normal(kw_, (3, 3, cout), jnp.float32)
        else:
            # (Cin, Cout) == PyTorch weight[oc, ic, 0, 0] transposed
            w = 0.2 * jax.random.normal(kw_, (cin, cout), jnp.float32)
        layers.append(dict(type=typ, w=w, scale=scale, bias=bias))
    return dict(branch_2=layers, activation=activation)


# ----------------------------------------------------------------------------
# Pure-JAX reference (lax convs) for correctness check
# ----------------------------------------------------------------------------
def channel_shuffle_nchw(x, groups=2):
    B, C, H, W = x.shape
    x = x.reshape(B, groups, C // groups, H, W)
    x = jnp.transpose(x, (0, 2, 1, 3, 4))
    return x.reshape(B, C, H, W)


def ref_forward(x_nchw, params):
    act = params['activation']
    c = x_nchw.shape[1] // 2
    x1, h = x_nchw[:, :c], x_nchw[:, c:]
    for layer in params['branch_2']:
        if layer['type'] == 'g3':
            cin = h.shape[1]
            wt = jnp.transpose(layer['w'], (2, 0, 1))[:, None, :, :]   # (Cout,1,3,3)
            y = jax.lax.conv_general_dilated(
                h, wt, (1, 1), ((1, 1), (1, 1)), feature_group_count=cin,
                dimension_numbers=('NCHW', 'OIHW', 'NCHW'),
                precision=jax.lax.Precision.HIGHEST)
            y = y * layer['scale'][None, :, None, None] + layer['bias'][None, :, None, None]
        else:
            wt = jnp.transpose(layer['w'], (1, 0))[:, :, None, None]   # (Cout,Cin,1,1)
            y = jax.lax.conv_general_dilated(
                h, wt, (1, 1), ((0, 0), (0, 0)),
                dimension_numbers=('NCHW', 'OIHW', 'NCHW'),
                precision=jax.lax.Precision.HIGHEST)
            y = y * layer['scale'][None, :, None, None] + layer['bias'][None, :, None, None]
            if act == 'hswish':
                y = y * jnp.clip(y + 3.0, 0.0, 6.0) / 6.0
            elif act == 'relu':
                y = jnp.clip(y, 0.0, 6.0)
        h = y
    out = jnp.concatenate([x1, h], axis=1)
    return channel_shuffle_nchw(out, groups=2)


if __name__ == "__main__":
    key = jax.random.PRNGKey(0)
    kx, kp = jax.random.split(key)
    N, C, H, W = 2, 8, 16, 16                      # stride=1 block: in == out == 8
    x = jax.random.normal(kx, (N, C, H, W), jnp.float32)
    params = init_shuffle_block_params(kp, C, C, activation='hswish')

    fwd = jax.jit(lambda xx: shuffle_block_x_forward(xx, params))
    out = jax.block_until_ready(fwd(x))
    assert out.shape == (N, C, H, W)

    ref = jax.block_until_ready(ref_forward(x, params))
    np.testing.assert_allclose(np.asarray(out), np.asarray(ref), rtol=2e-3, atol=2e-3)
    print("KERNEL_OK")
</pallas_src>

<mosaic_0001>
module attributes {stable_mosaic.version = 11 : i64} {
  func.func @kernel(%arg0: i32, %arg1: memref<1x8x256xf32, #tpu.memory_space<vmem>>, %arg2: memref<8x9xf32, #tpu.memory_space<vmem>>, %arg3: memref<8x1xf32, #tpu.memory_space<vmem>>, %arg4: memref<4x8xf32, #tpu.memory_space<vmem>>, %arg5: memref<4x1xf32, #tpu.memory_space<vmem>>, %arg6: memref<4x9xf32, #tpu.memory_space<vmem>>, %arg7: memref<4x1xf32, #tpu.memory_space<vmem>>, %arg8: memref<4x4xf32, #tpu.memory_space<vmem>>, %arg9: memref<4x1xf32, #tpu.memory_space<vmem>>, %arg10: memref<4x9xf32, #tpu.memory_space<vmem>>, %arg11: memref<4x1xf32, #tpu.memory_space<vmem>>, %arg12: memref<4x4xf32, #tpu.memory_space<vmem>>, %arg13: memref<4x1xf32, #tpu.memory_space<vmem>>, %arg14: memref<1x8x256xf32, #tpu.memory_space<vmem>>) attributes {dimension_semantics = [#tpu.dimension_semantics<parallel>], iteration_bounds = array<i64: 2>, scalar_prefetch = 0 : i64, scratch_operands = 0 : i64, tpu.core_type = #tpu.core_type<tc>, window_params = [{transform_indices = @transform_0, window_bounds = array<i64: 1, 8, 256>}, {pipeline_mode = #tpu.pipeline_mode<synchronous>, transform_indices = @transform_1, window_bounds = array<i64: 8, 9>}, {pipeline_mode = #tpu.pipeline_mode<synchronous>, transform_indices = @transform_2, window_bounds = array<i64: 8, 1>}, {pipeline_mode = #tpu.pipeline_mode<synchronous>, transform_indices = @transform_3, window_bounds = array<i64: 4, 8>}, {pipeline_mode = #tpu.pipeline_mode<synchronous>, transform_indices = @transform_4, window_bounds = array<i64: 4, 1>}, {pipeline_mode = #tpu.pipeline_mode<synchronous>, transform_indices = @transform_5, window_bounds = array<i64: 4, 9>}, {pipeline_mode = #tpu.pipeline_mode<synchronous>, transform_indices = @transform_6, window_bounds = array<i64: 4, 1>}, {pipeline_mode = #tpu.pipeline_mode<synchronous>, transform_indices = @transform_7, window_bounds = array<i64: 4, 4>}, {pipeline_mode = #tpu.pipeline_mode<synchronous>, transform_indices = @transform_8, window_bounds = array<i64: 4, 1>}, {pipeline_mode = #tpu.pipeline_mode<synchronous>, transform_indices = @transform_9, window_bounds = array<i64: 4, 9>}, {pipeline_mode = #tpu.pipeline_mode<synchronous>, transform_indices = @transform_10, window_bounds = array<i64: 4, 1>}, {pipeline_mode = #tpu.pipeline_mode<synchronous>, transform_indices = @transform_11, window_bounds = array<i64: 4, 4>}, {pipeline_mode = #tpu.pipeline_mode<synchronous>, transform_indices = @transform_12, window_bounds = array<i64: 4, 1>}, {transform_indices = @transform_13, window_bounds = array<i64: 1, 8, 256>}]} {
    %c0 = arith.constant 0 : index
    %c0_0 = arith.constant 0 : index
    %c0_1 = arith.constant 0 : index
    %0 = vector.load %arg1[%c0, %c0_0, %c0_1] : memref<1x8x256xf32, #tpu.memory_space<vmem>>, vector<1x8x256xf32>
    %1 = vector.shape_cast %0 : vector<1x8x256xf32> to vector<8x256xf32>
    %2 = tpu.iota {dimensions = array<i32: 1>} : vector<1x256xi32>
    %c16_i32 = arith.constant 16 : i32
    %c0_i32 = arith.constant 0 : i32
    %3 = arith.cmpi eq, %c16_i32, %c0_i32 : i32
    %c1_i32 = arith.constant 1 : i32
    %4 = arith.select %3, %c1_i32, %c16_i32 : i32
    %5 = vector.broadcast %4 : i32 to vector<1x256xi32>
    %6 = arith.remsi %2, %5 : vector<1x256xi32>
    %c0_i32_2 = arith.constant 0 : i32
    %7 = vector.broadcast %c0_i32_2 : i32 to vector<1x256xi32>
    %8 = arith.cmpi ne, %6, %7 : vector<1x256xi32>
    %c0_i32_3 = arith.constant 0 : i32
    %9 = vector.broadcast %c0_i32_3 : i32 to vector<1x256xi32>
    %10 = arith.cmpi slt, %6, %9 : vector<1x256xi32>
    %c0_i32_4 = arith.constant 0 : i32
    %11 = arith.cmpi slt, %4, %c0_i32_4 : i32
    %12 = vector.broadcast %11 : i1 to vector<1x256xi1>
    %13 = vector.broadcast %12 : vector<1x256xi1> to vector<1x256xi1>
    %14 = arith.xori %10, %13 : vector<1x256xi1>
    %15 = arith.andi %14, %8 : vector<1x256xi1>
    %16 = vector.broadcast %4 : i32 to vector<1x256xi32>
    %17 = arith.addi %6, %16 : vector<1x256xi32>
    %18 = arith.select %15, %17, %6 : vector<1x256xi1>, vector<1x256xi32>
    %19 = vector.extract_strided_slice %1 {offsets = [4, 0], sizes = [4, 256], strides = [1, 1]} : vector<8x256xf32> to vector<4x256xf32>
    %c0_5 = arith.constant 0 : index
    %c0_6 = arith.constant 0 : index
    %20 = vector.load %arg2[%c0_5, %c0_6] : memref<8x9xf32, #tpu.memory_space<vmem>>, vector<8x9xf32>
    %c0_7 = arith.constant 0 : index
    %c0_8 = arith.constant 0 : index
    %21 = vector.load %arg3[%c0_7, %c0_8] : memref<8x1xf32, #tpu.memory_space<vmem>>, vector<8x1xf32>
    %22 = vector.extract_strided_slice %19 {offsets = [0, 0], sizes = [1, 256], strides = [1, 1]} : vector<4x256xf32> to vector<1x256xf32>
    %23 = vector.extract_strided_slice %19 {offsets = [0, 0], sizes = [1, 256], strides = [1, 1]} : vector<4x256xf32> to vector<1x256xf32>
    %24 = vector.extract_strided_slice %19 {offsets = [1, 0], sizes = [1, 256], strides = [1, 1]} : vector<4x256xf32> to vector<1x256xf32>
    %25 = vector.extract_strided_slice %19 {offsets = [1, 0], sizes = [1, 256], strides = [1, 1]} : vector<4x256xf32> to vector<1x256xf32>
    %26 = vector.extract_strided_slice %19 {offsets = [2, 0], sizes = [1, 256], strides = [1, 1]} : vector<4x256xf32> to vector<1x256xf32>
    %27 = vector.extract_strided_slice %19 {offsets = [2, 0], sizes = [1, 256], strides = [1, 1]} : vector<4x256xf32> to vector<1x256xf32>
    %28 = vector.extract_strided_slice %19 {offsets = [3, 0], sizes = [1, 256], strides = [1, 1]} : vector<4x256xf32> to vector<1x256xf32>
    %29 = vector.extract_strided_slice %19 {offsets = [3, 0], sizes = [1, 256], strides = [1, 1]} : vector<4x256xf32> to vector<1x256xf32>
    %30 = tpu.concatenate %22, %23, %24, %25, %26, %27, %28, %29 in 0 : vector<1x256xf32>, vector<1x256xf32>, vector<1x256xf32>, vector<1x256xf32>, vector<1x256xf32>, vector<1x256xf32>, vector<1x256xf32>, vector<1x256xf32> -> vector<8x256xf32>
    %cst = arith.constant 0.000000e+00 : f32
    %31 = vector.broadcast %cst : f32 to vector<8x17xf32>
    %32 = tpu.concatenate %31, %30, %31 in 1 : vector<8x17xf32>, vector<8x256xf32>, vector<8x17xf32> -> vector<8x290xf32>
    %cst_9 = arith.constant 0.000000e+00 : f32
    %33 = vector.broadcast %cst_9 : f32 to vector<8x256xf32>
    %34 = vector.extract_strided_slice %32 {offsets = [0, 0], sizes = [8, 256], strides = [1, 1]} : vector<8x290xf32> to vector<8x256xf32>
    %c1_i32_10 = arith.constant 1 : i32
    %35 = vector.broadcast %c1_i32_10 : i32 to vector<1x256xi32>
    %36 = arith.cmpi sge, %18, %35 : vector<1x256xi32>
    %cst_11 = arith.constant 0.000000e+00 : f32
    %37 = vector.shape_cast %36 : vector<1x256xi1> to vector<1x256xi1>
    %38 = vector.broadcast %37 : vector<1x256xi1> to vector<8x256xi1>
    %39 = vector.broadcast %cst_11 : f32 to vector<8x256xf32>
    %40 = arith.select %38, %34, %39 : vector<8x256xi1>, vector<8x256xf32>
    %41 = vector.extract_strided_slice %20 {offsets = [0, 0], sizes = [8, 1], strides = [1, 1]} : vector<8x9xf32> to vector<8x1xf32>
    %42 = vector.broadcast %41 : vector<8x1xf32> to vector<8x256xf32>
    %43 = arith.mulf %40, %42 : vector<8x256xf32>
    %44 = arith.addf %33, %43 : vector<8x256xf32>
    %45 = vector.extract_strided_slice %32 {offsets = [0, 1], sizes = [8, 256], strides = [1, 1]} : vector<8x290xf32> to vector<8x256xf32>
    %46 = vector.extract_strided_slice %20 {offsets = [0, 1], sizes = [8, 1], strides = [1, 1]} : vector<8x9xf32> to vector<8x1xf32>
    %47 = vector.broadcast %46 : vector<8x1xf32> to vector<8x256xf32>
    %48 = arith.mulf %45, %47 : vector<8x256xf32>
    %49 = arith.addf %44, %48 : vector<8x256xf32>
    %50 = vector.extract_strided_slice %32 {offsets = [0, 2], sizes = [8, 256], strides = [1, 1]} : vector<8x290xf32> to vector<8x256xf32>
    %c14_i32 = arith.constant 14 : i32
    %51 = vector.broadcast %c14_i32 : i32 to vector<1x256xi32>
    %52 = arith.cmpi sle, %18, %51 : vector<1x256xi32>
    %cst_12 = arith.constant 0.000000e+00 : f32
    %53 = vector.shape_cast %52 : vector<1x256xi1> to vector<1x256xi1>
    %54 = vector.broadcast %53 : vector<1x256xi1> to vector<8x256xi1>
    %55 = vector.broadcast %cst_12 : f32 to vector<8x256xf32>
    %56 = arith.select %54, %50, %55 : vector<8x256xi1>, vector<8x256xf32>
    %57 = vector.extract_strided_slice %20 {offsets = [0, 2], sizes = [8, 1], strides = [1, 1]} : vector<8x9xf32> to vector<8x1xf32>
    %58 = vector.broadcast %57 : vector<8x1xf32> to vector<8x256xf32>
    %59 = arith.mulf %56, %58 : vector<8x256xf32>
    %60 = arith.addf %49, %59 : vector<8x256xf32>
    %61 = vector.extract_strided_slice %32 {offsets = [0, 16], sizes = [8, 256], strides = [1, 1]} : vector<8x290xf32> to vector<8x256xf32>
    %c1_i32_13 = arith.constant 1 : i32
    %62 = vector.broadcast %c1_i32_13 : i32 to vector<1x256xi32>
    %63 = arith.cmpi sge, %18, %62 : vector<1x256xi32>
    %cst_14 = arith.constant 0.000000e+00 : f32
    %64 = vector.shape_cast %63 : vector<1x256xi1> to vector<1x256xi1>
    %65 = vector.broadcast %64 : vector<1x256xi1> to vector<8x256xi1>
    %66 = vector.broadcast %cst_14 : f32 to vector<8x256xf32>
    %67 = arith.select %65, %61, %66 : vector<8x256xi1>, vector<8x256xf32>
    %68 = vector.extract_strided_slice %20 {offsets = [0, 3], sizes = [8, 1], strides = [1, 1]} : vector<8x9xf32> to vector<8x1xf32>
    %69 = vector.broadcast %68 : vector<8x1xf32> to vector<8x256xf32>
    %70 = arith.mulf %67, %69 : vector<8x256xf32>
    %71 = arith.addf %60, %70 : vector<8x256xf32>
    %72 = vector.extract_strided_slice %32 {offsets = [0, 17], sizes = [8, 256], strides = [1, 1]} : vector<8x290xf32> to vector<8x256xf32>
    %73 = vector.extract_strided_slice %20 {offsets = [0, 4], sizes = [8, 1], strides = [1, 1]} : vector<8x9xf32> to vector<8x1xf32>
    %74 = vector.broadcast %73 : vector<8x1xf32> to vector<8x256xf32>
    %75 = arith.mulf %72, %74 : vector<8x256xf32>
    %76 = arith.addf %71, %75 : vector<8x256xf32>
    %77 = vector.extract_strided_slice %32 {offsets = [0, 18], sizes = [8, 256], strides = [1, 1]} : vector<8x290xf32> to vector<8x256xf32>
    %c14_i32_15 = arith.constant 14 : i32
    %78 = vector.broadcast %c14_i32_15 : i32 to vector<1x256xi32>
    %79 = arith.cmpi sle, %18, %78 : vector<1x256xi32>
    %cst_16 = arith.constant 0.000000e+00 : f32
    %80 = vector.shape_cast %79 : vector<1x256xi1> to vector<1x256xi1>
    %81 = vector.broadcast %80 : vector<1x256xi1> to vector<8x256xi1>
    %82 = vector.broadcast %cst_16 : f32 to vector<8x256xf32>
    %83 = arith.select %81, %77, %82 : vector<8x256xi1>, vector<8x256xf32>
    %84 = vector.extract_strided_slice %20 {offsets = [0, 5], sizes = [8, 1], strides = [1, 1]} : vector<8x9xf32> to vector<8x1xf32>
    %85 = vector.broadcast %84 : vector<8x1xf32> to vector<8x256xf32>
    %86 = arith.mulf %83, %85 : vector<8x256xf32>
    %87 = arith.addf %76, %86 : vector<8x256xf32>
    %88 = vector.extract_strided_slice %32 {offsets = [0, 32], sizes = [8, 256], strides = [1, 1]} : vector<8x290xf32> to vector<8x256xf32>
    %c1_i32_17 = arith.constant 1 : i32
    %89 = vector.broadcast %c1_i32_17 : i32 to vector<1x256xi32>
    %90 = arith.cmpi sge, %18, %89 : vector<1x256xi32>
    %cst_18 = arith.constant 0.000000e+00 : f32
    %91 = vector.shape_cast %90 : vector<1x256xi1> to vector<1x256xi1>
    %92 = vector.broadcast %91 : vector<1x256xi1> to vector<8x256xi1>
    %93 = vector.broadcast %cst_18 : f32 to vector<8x256xf32>
    %94 = arith.select %92, %88, %93 : vector<8x256xi1>, vector<8x256xf32>
    %95 = vector.extract_strided_slice %20 {offsets = [0, 6], sizes = [8, 1], strides = [1, 1]} : vector<8x9xf32> to vector<8x1xf32>
    %96 = vector.broadcast %95 : vector<8x1xf32> to vector<8x256xf32>
    %97 = arith.mulf %94, %96 : vector<8x256xf32>
    %98 = arith.addf %87, %97 : vector<8x256xf32>
    %99 = vector.extract_strided_slice %32 {offsets = [0, 33], sizes = [8, 256], strides = [1, 1]} : vector<8x290xf32> to vector<8x256xf32>
    %100 = vector.extract_strided_slice %20 {offsets = [0, 7], sizes = [8, 1], strides = [1, 1]} : vector<8x9xf32> to vector<8x1xf32>
    %101 = vector.broadcast %100 : vector<8x1xf32> to vector<8x256xf32>
    %102 = arith.mulf %99, %101 : vector<8x256xf32>
    %103 = arith.addf %98, %102 : vector<8x256xf32>
    %104 = vector.extract_strided_slice %32 {offsets = [0, 34], sizes = [8, 256], strides = [1, 1]} : vector<8x290xf32> to vector<8x256xf32>
    %c14_i32_19 = arith.constant 14 : i32
    %105 = vector.broadcast %c14_i32_19 : i32 to vector<1x256xi32>
    %106 = arith.cmpi sle, %18, %105 : vector<1x256xi32>
    %cst_20 = arith.constant 0.000000e+00 : f32
    %107 = vector.shape_cast %106 : vector<1x256xi1> to vector<1x256xi1>
    %108 = vector.broadcast %107 : vector<1x256xi1> to vector<8x256xi1>
    %109 = vector.broadcast %cst_20 : f32 to vector<8x256xf32>
    %110 = arith.select %108, %104, %109 : vector<8x256xi1>, vector<8x256xf32>
    %111 = vector.extract_strided_slice %20 {offsets = [0, 8], sizes = [8, 1], strides = [1, 1]} : vector<8x9xf32> to vector<8x1xf32>
    %112 = vector.broadcast %111 : vector<8x1xf32> to vector<8x256xf32>
    %113 = arith.mulf %110, %112 : vector<8x256xf32>
    %114 = arith.addf %103, %113 : vector<8x256xf32>
    %115 = vector.broadcast %21 : vector<8x1xf32> to vector<8x256xf32>
    %116 = arith.addf %114, %115 : vector<8x256xf32>
    %c0_21 = arith.constant 0 : index
    %c0_22 = arith.constant 0 : index
    %117 = vector.load %arg4[%c0_21, %c0_22] : memref<4x8xf32, #tpu.memory_space<vmem>>, vector<4x8xf32>
    %c0_23 = arith.constant 0 : index
    %c0_24 = arith.constant 0 : index
    %118 = vector.load %arg5[%c0_23, %c0_24] : memref<4x1xf32, #tpu.memory_space<vmem>>, vector<4x1xf32>
    %cst_25 = arith.constant 0.000000e+00 : f32
    %119 = vector.broadcast %cst_25 : f32 to vector<4x256xf32>
    %120 = vector.extract_strided_slice %116 {offsets = [0, 0], sizes = [1, 256], strides = [1, 1]} : vector<8x256xf32> to vector<1x256xf32>
    %121 = vector.extract_strided_slice %117 {offsets = [0, 0], sizes = [4, 1], strides = [1, 1]} : vector<4x8xf32> to vector<4x1xf32>
    %122 = vector.broadcast %120 : vector<1x256xf32> to vector<4x256xf32>
    %123 = vector.broadcast %121 : vector<4x1xf32> to vector<4x256xf32>
    %124 = arith.mulf %122, %123 : vector<4x256xf32>
    %125 = arith.addf %119, %124 : vector<4x256xf32>
    %126 = vector.extract_strided_slice %116 {offsets = [1, 0], sizes = [1, 256], strides = [1, 1]} : vector<8x256xf32> to vector<1x256xf32>
    %127 = vector.extract_strided_slice %117 {offsets = [0, 1], sizes = [4, 1], strides = [1, 1]} : vector<4x8xf32> to vector<4x1xf32>
    %128 = vector.broadcast %126 : vector<1x256xf32> to vector<4x256xf32>
    %129 = vector.broadcast %127 : vector<4x1xf32> to vector<4x256xf32>
    %130 = arith.mulf %128, %129 : vector<4x256xf32>
    %131 = arith.addf %125, %130 : vector<4x256xf32>
    %132 = vector.extract_strided_slice %116 {offsets = [2, 0], sizes = [1, 256], strides = [1, 1]} : vector<8x256xf32> to vector<1x256xf32>
    %133 = vector.extract_strided_slice %117 {offsets = [0, 2], sizes = [4, 1], strides = [1, 1]} : vector<4x8xf32> to vector<4x1xf32>
    %134 = vector.broadcast %132 : vector<1x256xf32> to vector<4x256xf32>
    %135 = vector.broadcast %133 : vector<4x1xf32> to vector<4x256xf32>
    %136 = arith.mulf %134, %135 : vector<4x256xf32>
    %137 = arith.addf %131, %136 : vector<4x256xf32>
    %138 = vector.extract_strided_slice %116 {offsets = [3, 0], sizes = [1, 256], strides = [1, 1]} : vector<8x256xf32> to vector<1x256xf32>
    %139 = vector.extract_strided_slice %117 {offsets = [0, 3], sizes = [4, 1], strides = [1, 1]} : vector<4x8xf32> to vector<4x1xf32>
    %140 = vector.broadcast %138 : vector<1x256xf32> to vector<4x256xf32>
    %141 = vector.broadcast %139 : vector<4x1xf32> to vector<4x256xf32>
    %142 = arith.mulf %140, %141 : vector<4x256xf32>
    %143 = arith.addf %137, %142 : vector<4x256xf32>
    %144 = vector.extract_strided_slice %116 {offsets = [4, 0], sizes = [1, 256], strides = [1, 1]} : vector<8x256xf32> to vector<1x256xf32>
    %145 = vector.extract_strided_slice %117 {offsets = [0, 4], sizes = [4, 1], strides = [1, 1]} : vector<4x8xf32> to vector<4x1xf32>
    %146 = vector.broadcast %144 : vector<1x256xf32> to vector<4x256xf32>
    %147 = vector.broadcast %145 : vector<4x1xf32> to vector<4x256xf32>
    %148 = arith.mulf %146, %147 : vector<4x256xf32>
    %149 = arith.addf %143, %148 : vector<4x256xf32>
    %150 = vector.extract_strided_slice %116 {offsets = [5, 0], sizes = [1, 256], strides = [1, 1]} : vector<8x256xf32> to vector<1x256xf32>
    %151 = vector.extract_strided_slice %117 {offsets = [0, 5], sizes = [4, 1], strides = [1, 1]} : vector<4x8xf32> to vector<4x1xf32>
    %152 = vector.broadcast %150 : vector<1x256xf32> to vector<4x256xf32>
    %153 = vector.broadcast %151 : vector<4x1xf32> to vector<4x256xf32>
    %154 = arith.mulf %152, %153 : vector<4x256xf32>
    %155 = arith.addf %149, %154 : vector<4x256xf32>
    %156 = vector.extract_strided_slice %116 {offsets = [6, 0], sizes = [1, 256], strides = [1, 1]} : vector<8x256xf32> to vector<1x256xf32>
    %157 = vector.extract_strided_slice %117 {offsets = [0, 6], sizes = [4, 1], strides = [1, 1]} : vector<4x8xf32> to vector<4x1xf32>
    %158 = vector.broadcast %156 : vector<1x256xf32> to vector<4x256xf32>
    %159 = vector.broadcast %157 : vector<4x1xf32> to vector<4x256xf32>
    %160 = arith.mulf %158, %159 : vector<4x256xf32>
    %161 = arith.addf %155, %160 : vector<4x256xf32>
    %162 = vector.extract_strided_slice %116 {offsets = [7, 0], sizes = [1, 256], strides = [1, 1]} : vector<8x256xf32> to vector<1x256xf32>
    %163 = vector.extract_strided_slice %117 {offsets = [0, 7], sizes = [4, 1], strides = [1, 1]} : vector<4x8xf32> to vector<4x1xf32>
    %164 = vector.broadcast %162 : vector<1x256xf32> to vector<4x256xf32>
    %165 = vector.broadcast %163 : vector<4x1xf32> to vector<4x256xf32>
    %166 = arith.mulf %164, %165 : vector<4x256xf32>
    %167 = arith.addf %161, %166 : vector<4x256xf32>
    %168 = vector.broadcast %118 : vector<4x1xf32> to vector<4x256xf32>
    %169 = arith.addf %167, %168 : vector<4x256xf32>
    %cst_26 = arith.constant 3.000000e+00 : f32
    %170 = vector.broadcast %cst_26 : f32 to vector<4x256xf32>
    %171 = arith.addf %169, %170 : vector<4x256xf32>
    %cst_27 = arith.constant 0.000000e+00 : f32
    %cst_28 = arith.constant 6.000000e+00 : f32
    %172 = vector.broadcast %cst_27 : f32 to vector<4x256xf32>
    %173 = arith.maximumf %172, %171 : vector<4x256xf32>
    %174 = vector.broadcast %cst_28 : f32 to vector<4x256xf32>
    %175 = arith.minimumf %174, %173 : vector<4x256xf32>
    %176 = arith.mulf %169, %175 : vector<4x256xf32>
    %cst_29 = arith.constant 0.166666672 : f32
    %177 = vector.broadcast %cst_29 : f32 to vector<4x256xf32>
    %178 = arith.mulf %176, %177 : vector<4x256xf32>
    %c0_30 = arith.constant 0 : index
    %c0_31 = arith.constant 0 : index
    %179 = vector.load %arg6[%c0_30, %c0_31] : memref<4x9xf32, #tpu.memory_space<vmem>>, vector<4x9xf32>
    %c0_32 = arith.constant 0 : index
    %c0_33 = arith.constant 0 : index
    %180 = vector.load %arg7[%c0_32, %c0_33] : memref<4x1xf32, #tpu.memory_space<vmem>>, vector<4x1xf32>
    %cst_34 = arith.constant 0.000000e+00 : f32
    %181 = vector.broadcast %cst_34 : f32 to vector<4x17xf32>
    %182 = tpu.concatenate %181, %178, %181 in 1 : vector<4x17xf32>, vector<4x256xf32>, vector<4x17xf32> -> vector<4x290xf32>
    %cst_35 = arith.constant 0.000000e+00 : f32
    %183 = vector.broadcast %cst_35 : f32 to vector<4x256xf32>
    %184 = vector.extract_strided_slice %182 {offsets = [0, 0], sizes = [4, 256], strides = [1, 1]} : vector<4x290xf32> to vector<4x256xf32>
    %c1_i32_36 = arith.constant 1 : i32
    %185 = vector.broadcast %c1_i32_36 : i32 to vector<1x256xi32>
    %186 = arith.cmpi sge, %18, %185 : vector<1x256xi32>
    %cst_37 = arith.constant 0.000000e+00 : f32
    %187 = vector.shape_cast %186 : vector<1x256xi1> to vector<1x256xi1>
    %188 = vector.broadcast %187 : vector<1x256xi1> to vector<4x256xi1>
    %189 = vector.broadcast %cst_37 : f32 to vector<4x256xf32>
    %190 = arith.select %188, %184, %189 : vector<4x256xi1>, vector<4x256xf32>
    %191 = vector.extract_strided_slice %179 {offsets = [0, 0], sizes = [4, 1], strides = [1, 1]} : vector<4x9xf32> to vector<4x1xf32>
    %192 = vector.broadcast %191 : vector<4x1xf32> to vector<4x256xf32>
    %193 = arith.mulf %190, %192 : vector<4x256xf32>
    %194 = arith.addf %183, %193 : vector<4x256xf32>
    %195 = vector.extract_strided_slice %182 {offsets = [0, 1], sizes = [4, 256], strides = [1, 1]} : vector<4x290xf32> to vector<4x256xf32>
    %196 = vector.extract_strided_slice %179 {offsets = [0, 1], sizes = [4, 1], strides = [1, 1]} : vector<4x9xf32> to vector<4x1xf32>
    %197 = vector.broadcast %196 : vector<4x1xf32> to vector<4x256xf32>
    %198 = arith.mulf %195, %197 : vector<4x256xf32>
    %199 = arith.addf %194, %198 : vector<4x256xf32>
    %200 = vector.extract_strided_slice %182 {offsets = [0, 2], sizes = [4, 256], strides = [1, 1]} : vector<4x290xf32> to vector<4x256xf32>
    %c14_i32_38 = arith.constant 14 : i32
    %201 = vector.broadcast %c14_i32_38 : i32 to vector<1x256xi32>
    %202 = arith.cmpi sle, %18, %201 : vector<1x256xi32>
    %cst_39 = arith.constant 0.000000e+00 : f32
    %203 = vector.shape_cast %202 : vector<1x256xi1> to vector<1x256xi1>
    %204 = vector.broadcast %203 : vector<1x256xi1> to vector<4x256xi1>
    %205 = vector.broadcast %cst_39 : f32 to vector<4x256xf32>
    %206 = arith.select %204, %200, %205 : vector<4x256xi1>, vector<4x256xf32>
    %207 = vector.extract_strided_slice %179 {offsets = [0, 2], sizes = [4, 1], strides = [1, 1]} : vector<4x9xf32> to vector<4x1xf32>
    %208 = vector.broadcast %207 : vector<4x1xf32> to vector<4x256xf32>
    %209 = arith.mulf %206, %208 : vector<4x256xf32>
    %210 = arith.addf %199, %209 : vector<4x256xf32>
    %211 = vector.extract_strided_slice %182 {offsets = [0, 16], sizes = [4, 256], strides = [1, 1]} : vector<4x290xf32> to vector<4x256xf32>
    %c1_i32_40 = arith.constant 1 : i32
    %212 = vector.broadcast %c1_i32_40 : i32 to vector<1x256xi32>
    %213 = arith.cmpi sge, %18, %212 : vector<1x256xi32>
    %cst_41 = arith.constant 0.000000e+00 : f32
    %214 = vector.shape_cast %213 : vector<1x256xi1> to vector<1x256xi1>
    %215 = vector.broadcast %214 : vector<1x256xi1> to vector<4x256xi1>
    %216 = vector.broadcast %cst_41 : f32 to vector<4x256xf32>
    %217 = arith.select %215, %211, %216 : vector<4x256xi1>, vector<4x256xf32>
    %218 = vector.extract_strided_slice %179 {offsets = [0, 3], sizes = [4, 1], strides = [1, 1]} : vector<4x9xf32> to vector<4x1xf32>
    %219 = vector.broadcast %218 : vector<4x1xf32> to vector<4x256xf32>
    %220 = arith.mulf %217, %219 : vector<4x256xf32>
    %221 = arith.addf %210, %220 : vector<4x256xf32>
    %222 = vector.extract_strided_slice %182 {offsets = [0, 17], sizes = [4, 256], strides = [1, 1]} : vector<4x290xf32> to vector<4x256xf32>
    %223 = vector.extract_strided_slice %179 {offsets = [0, 4], sizes = [4, 1], strides = [1, 1]} : vector<4x9xf32> to vector<4x1xf32>
    %224 = vector.broadcast %223 : vector<4x1xf32> to vector<4x256xf32>
    %225 = arith.mulf %222, %224 : vector<4x256xf32>
    %226 = arith.addf %221, %225 : vector<4x256xf32>
    %227 = vector.extract_strided_slice %182 {offsets = [0, 18], sizes = [4, 256], strides = [1, 1]} : vector<4x290xf32> to vector<4x256xf32>
    %c14_i32_42 = arith.constant 14 : i32
    %228 = vector.broadcast %c14_i32_42 : i32 to vector<1x256xi32>
    %229 = arith.cmpi sle, %18, %228 : vector<1x256xi32>
    %cst_43 = arith.constant 0.000000e+00 : f32
    %230 = vector.shape_cast %229 : vector<1x256xi1> to vector<1x256xi1>
    %231 = vector.broadcast %230 : vector<1x256xi1> to vector<4x256xi1>
    %232 = vector.broadcast %cst_43 : f32 to vector<4x256xf32>
    %233 = arith.select %231, %227, %232 : vector<4x256xi1>, vector<4x256xf32>
    %234 = vector.extract_strided_slice %179 {offsets = [0, 5], sizes = [4, 1], strides = [1, 1]} : vector<4x9xf32> to vector<4x1xf32>
    %235 = vector.broadcast %234 : vector<4x1xf32> to vector<4x256xf32>
    %236 = arith.mulf %233, %235 : vector<4x256xf32>
    %237 = arith.addf %226, %236 : vector<4x256xf32>
    %238 = vector.extract_strided_slice %182 {offsets = [0, 32], sizes = [4, 256], strides = [1, 1]} : vector<4x290xf32> to vector<4x256xf32>
    %c1_i32_44 = arith.constant 1 : i32
    %239 = vector.broadcast %c1_i32_44 : i32 to vector<1x256xi32>
    %240 = arith.cmpi sge, %18, %239 : vector<1x256xi32>
    %cst_45 = arith.constant 0.000000e+00 : f32
    %241 = vector.shape_cast %240 : vector<1x256xi1> to vector<1x256xi1>
    %242 = vector.broadcast %241 : vector<1x256xi1> to vector<4x256xi1>
    %243 = vector.broadcast %cst_45 : f32 to vector<4x256xf32>
    %244 = arith.select %242, %238, %243 : vector<4x256xi1>, vector<4x256xf32>
    %245 = vector.extract_strided_slice %179 {offsets = [0, 6], sizes = [4, 1], strides = [1, 1]} : vector<4x9xf32> to vector<4x1xf32>
    %246 = vector.broadcast %245 : vector<4x1xf32> to vector<4x256xf32>
    %247 = arith.mulf %244, %246 : vector<4x256xf32>
    %248 = arith.addf %237, %247 : vector<4x256xf32>
    %249 = vector.extract_strided_slice %182 {offsets = [0, 33], sizes = [4, 256], strides = [1, 1]} : vector<4x290xf32> to vector<4x256xf32>
    %250 = vector.extract_strided_slice %179 {offsets = [0, 7], sizes = [4, 1], strides = [1, 1]} : vector<4x9xf32> to vector<4x1xf32>
    %251 = vector.broadcast %250 : vector<4x1xf32> to vector<4x256xf32>
    %252 = arith.mulf %249, %251 : vector<4x256xf32>
    %253 = arith.addf %248, %252 : vector<4x256xf32>
    %254 = vector.extract_strided_slice %182 {offsets = [0, 34], sizes = [4, 256], strides = [1, 1]} : vector<4x290xf32> to vector<4x256xf32>
    %c14_i32_46 = arith.constant 14 : i32
    %255 = vector.broadcast %c14_i32_46 : i32 to vector<1x256xi32>
    %256 = arith.cmpi sle, %18, %255 : vector<1x256xi32>
    %cst_47 = arith.constant 0.000000e+00 : f32
    %257 = vector.shape_cast %256 : vector<1x256xi1> to vector<1x256xi1>
    %258 = vector.broadcast %257 : vector<1x256xi1> to vector<4x256xi1>
    %259 = vector.broadcast %cst_47 : f32 to vector<4x256xf32>
    %260 = arith.select %258, %254, %259 : vector<4x256xi1>, vector<4x256xf32>
    %261 = vector.extract_strided_slice %179 {offsets = [0, 8], sizes = [4, 1], strides = [1, 1]} : vector<4x9xf32> to vector<4x1xf32>
    %262 = vector.broadcast %261 : vector<4x1xf32> to vector<4x256xf32>
    %263 = arith.mulf %260, %262 : vector<4x256xf32>
    %264 = arith.addf %253, %263 : vector<4x256xf32>
    %265 = vector.broadcast %180 : vector<4x1xf32> to vector<4x256xf32>
    %266 = arith.addf %264, %265 : vector<4x256xf32>
    %c0_48 = arith.constant 0 : index
    %c0_49 = arith.constant 0 : index
    %267 = vector.load %arg8[%c0_48, %c0_49] : memref<4x4xf32, #tpu.memory_space<vmem>>, vector<4x4xf32>
    %c0_50 = arith.constant 0 : index
    %c0_51 = arith.constant 0 : index
    %268 = vector.load %arg9[%c0_50, %c0_51] : memref<4x1xf32, #tpu.memory_space<vmem>>, vector<4x1xf32>
    %cst_52 = arith.constant 0.000000e+00 : f32
    %269 = vector.broadcast %cst_52 : f32 to vector<4x256xf32>
    %270 = vector.extract_strided_slice %266 {offsets = [0, 0], sizes = [1, 256], strides = [1, 1]} : vector<4x256xf32> to vector<1x256xf32>
    %271 = vector.extract_strided_slice %267 {offsets = [0, 0], sizes = [4, 1], strides = [1, 1]} : vector<4x4xf32> to vector<4x1xf32>
    %272 = vector.broadcast %270 : vector<1x256xf32> to vector<4x256xf32>
    %273 = vector.broadcast %271 : vector<4x1xf32> to vector<4x256xf32>
    %274 = arith.mulf %272, %273 : vector<4x256xf32>
    %275 = arith.addf %269, %274 : vector<4x256xf32>
    %276 = vector.extract_strided_slice %266 {offsets = [1, 0], sizes = [1, 256], strides = [1, 1]} : vector<4x256xf32> to vector<1x256xf32>
    %277 = vector.extract_strided_slice %267 {offsets = [0, 1], sizes = [4, 1], strides = [1, 1]} : vector<4x4xf32> to vector<4x1xf32>
    %278 = vector.broadcast %276 : vector<1x256xf32> to vector<4x256xf32>
    %279 = vector.broadcast %277 : vector<4x1xf32> to vector<4x256xf32>
    %280 = arith.mulf %278, %279 : vector<4x256xf32>
    %281 = arith.addf %275, %280 : vector<4x256xf32>
    %282 = vector.extract_strided_slice %266 {offsets = [2, 0], sizes = [1, 256], strides = [1, 1]} : vector<4x256xf32> to vector<1x256xf32>
    %283 = vector.extract_strided_slice %267 {offsets = [0, 2], sizes = [4, 1], strides = [1, 1]} : vector<4x4xf32> to vector<4x1xf32>
    %284 = vector.broadcast %282 : vector<1x256xf32> to vector<4x256xf32>
    %285 = vector.broadcast %283 : vector<4x1xf32> to vector<4x256xf32>
    %286 = arith.mulf %284, %285 : vector<4x256xf32>
    %287 = arith.addf %281, %286 : vector<4x256xf32>
    %288 = vector.extract_strided_slice %266 {offsets = [3, 0], sizes = [1, 256], strides = [1, 1]} : vector<4x256xf32> to vector<1x256xf32>
    %289 = vector.extract_strided_slice %267 {offsets = [0, 3], sizes = [4, 1], strides = [1, 1]} : vector<4x4xf32> to vector<4x1xf32>
    %290 = vector.broadcast %288 : vector<1x256xf32> to vector<4x256xf32>
    %291 = vector.broadcast %289 : vector<4x1xf32> to vector<4x256xf32>
    %292 = arith.mulf %290, %291 : vector<4x256xf32>
    %293 = arith.addf %287, %292 : vector<4x256xf32>
    %294 = vector.broadcast %268 : vector<4x1xf32> to vector<4x256xf32>
    %295 = arith.addf %293, %294 : vector<4x256xf32>
    %cst_53 = arith.constant 3.000000e+00 : f32
    %296 = vector.broadcast %cst_53 : f32 to vector<4x256xf32>
    %297 = arith.addf %295, %296 : vector<4x256xf32>
    %cst_54 = arith.constant 0.000000e+00 : f32
    %cst_55 = arith.constant 6.000000e+00 : f32
    %298 = vector.broadcast %cst_54 : f32 to vector<4x256xf32>
    %299 = arith.maximumf %298, %297 : vector<4x256xf32>
    %300 = vector.broadcast %cst_55 : f32 to vector<4x256xf32>
    %301 = arith.minimumf %300, %299 : vector<4x256xf32>
    %302 = arith.mulf %295, %301 : vector<4x256xf32>
    %cst_56 = arith.constant 0.166666672 : f32
    %303 = vector.broadcast %cst_56 : f32 to vector<4x256xf32>
    %304 = arith.mulf %302, %303 : vector<4x256xf32>
    %c0_57 = arith.constant 0 : index
    %c0_58 = arith.constant 0 : index
    %305 = vector.load %arg10[%c0_57, %c0_58] : memref<4x9xf32, #tpu.memory_space<vmem>>, vector<4x9xf32>
    %c0_59 = arith.constant 0 : index
    %c0_60 = arith.constant 0 : index
    %306 = vector.load %arg11[%c0_59, %c0_60] : memref<4x1xf32, #tpu.memory_space<vmem>>, vector<4x1xf32>
    %cst_61 = arith.constant 0.000000e+00 : f32
    %307 = vector.broadcast %cst_61 : f32 to vector<4x17xf32>
    %308 = tpu.concatenate %307, %304, %307 in 1 : vector<4x17xf32>, vector<4x256xf32>, vector<4x17xf32> -> vector<4x290xf32>
    %cst_62 = arith.constant 0.000000e+00 : f32
    %309 = vector.broadcast %cst_62 : f32 to vector<4x256xf32>
    %310 = vector.extract_strided_slice %308 {offsets = [0, 0], sizes = [4, 256], strides = [1, 1]} : vector<4x290xf32> to vector<4x256xf32>
    %c1_i32_63 = arith.constant 1 : i32
    %311 = vector.broadcast %c1_i32_63 : i32 to vector<1x256xi32>
    %312 = arith.cmpi sge, %18, %311 : vector<1x256xi32>
    %cst_64 = arith.constant 0.000000e+00 : f32
    %313 = vector.shape_cast %312 : vector<1x256xi1> to vector<1x256xi1>
    %314 = vector.broadcast %313 : vector<1x256xi1> to vector<4x256xi1>
    %315 = vector.broadcast %cst_64 : f32 to vector<4x256xf32>
    %316 = arith.select %314, %310, %315 : vector<4x256xi1>, vector<4x256xf32>
    %317 = vector.extract_strided_slice %305 {offsets = [0, 0], sizes = [4, 1], strides = [1, 1]} : vector<4x9xf32> to vector<4x1xf32>
    %318 = vector.broadcast %317 : vector<4x1xf32> to vector<4x256xf32>
    %319 = arith.mulf %316, %318 : vector<4x256xf32>
    %320 = arith.addf %309, %319 : vector<4x256xf32>
    %321 = vector.extract_strided_slice %308 {offsets = [0, 1], sizes = [4, 256], strides = [1, 1]} : vector<4x290xf32> to vector<4x256xf32>
    %322 = vector.extract_strided_slice %305 {offsets = [0, 1], sizes = [4, 1], strides = [1, 1]} : vector<4x9xf32> to vector<4x1xf32>
    %323 = vector.broadcast %322 : vector<4x1xf32> to vector<4x256xf32>
    %324 = arith.mulf %321, %323 : vector<4x256xf32>
    %325 = arith.addf %320, %324 : vector<4x256xf32>
    %326 = vector.extract_strided_slice %308 {offsets = [0, 2], sizes = [4, 256], strides = [1, 1]} : vector<4x290xf32> to vector<4x256xf32>
    %c14_i32_65 = arith.constant 14 : i32
    %327 = vector.broadcast %c14_i32_65 : i32 to vector<1x256xi32>
    %328 = arith.cmpi sle, %18, %327 : vector<1x256xi32>
    %cst_66 = arith.constant 0.000000e+00 : f32
    %329 = vector.shape_cast %328 : vector<1x256xi1> to vector<1x256xi1>
    %330 = vector.broadcast %329 : vector<1x256xi1> to vector<4x256xi1>
    %331 = vector.broadcast %cst_66 : f32 to vector<4x256xf32>
    %332 = arith.select %330, %326, %331 : vector<4x256xi1>, vector<4x256xf32>
    %333 = vector.extract_strided_slice %305 {offsets = [0, 2], sizes = [4, 1], strides = [1, 1]} : vector<4x9xf32> to vector<4x1xf32>
    %334 = vector.broadcast %333 : vector<4x1xf32> to vector<4x256xf32>
    %335 = arith.mulf %332, %334 : vector<4x256xf32>
    %336 = arith.addf %325, %335 : vector<4x256xf32>
    %337 = vector.extract_strided_slice %308 {offsets = [0, 16], sizes = [4, 256], strides = [1, 1]} : vector<4x290xf32> to vector<4x256xf32>
    %c1_i32_67 = arith.constant 1 : i32
    %338 = vector.broadcast %c1_i32_67 : i32 to vector<1x256xi32>
    %339 = arith.cmpi sge, %18, %338 : vector<1x256xi32>
    %cst_68 = arith.constant 0.000000e+00 : f32
    %340 = vector.shape_cast %339 : vector<1x256xi1> to vector<1x256xi1>
    %341 = vector.broadcast %340 : vector<1x256xi1> to vector<4x256xi1>
    %342 = vector.broadcast %cst_68 : f32 to vector<4x256xf32>
    %343 = arith.select %341, %337, %342 : vector<4x256xi1>, vector<4x256xf32>
    %344 = vector.extract_strided_slice %305 {offsets = [0, 3], sizes = [4, 1], strides = [1, 1]} : vector<4x9xf32> to vector<4x1xf32>
    %345 = vector.broadcast %344 : vector<4x1xf32> to vector<4x256xf32>
    %346 = arith.mulf %343, %345 : vector<4x256xf32>
    %347 = arith.addf %336, %346 : vector<4x256xf32>
    %348 = vector.extract_strided_slice %308 {offsets = [0, 17], sizes = [4, 256], strides = [1, 1]} : vector<4x290xf32> to vector<4x256xf32>
    %349 = vector.extract_strided_slice %305 {offsets = [0, 4], sizes = [4, 1], strides = [1, 1]} : vector<4x9xf32> to vector<4x1xf32>
    %350 = vector.broadcast %349 : vector<4x1xf32> to vector<4x256xf32>
    %351 = arith.mulf %348, %350 : vector<4x256xf32>
    %352 = arith.addf %347, %351 : vector<4x256xf32>
    %353 = vector.extract_strided_slice %308 {offsets = [0, 18], sizes = [4, 256], strides = [1, 1]} : vector<4x290xf32> to vector<4x256xf32>
    %c14_i32_69 = arith.constant 14 : i32
    %354 = vector.broadcast %c14_i32_69 : i32 to vector<1x256xi32>
    %355 = arith.cmpi sle, %18, %354 : vector<1x256xi32>
    %cst_70 = arith.constant 0.000000e+00 : f32
    %356 = vector.shape_cast %355 : vector<1x256xi1> to vector<1x256xi1>
    %357 = vector.broadcast %356 : vector<1x256xi1> to vector<4x256xi1>
    %358 = vector.broadcast %cst_70 : f32 to vector<4x256xf32>
    %359 = arith.select %357, %353, %358 : vector<4x256xi1>, vector<4x256xf32>
    %360 = vector.extract_strided_slice %305 {offsets = [0, 5], sizes = [4, 1], strides = [1, 1]} : vector<4x9xf32> to vector<4x1xf32>
    %361 = vector.broadcast %360 : vector<4x1xf32> to vector<4x256xf32>
    %362 = arith.mulf %359, %361 : vector<4x256xf32>
    %363 = arith.addf %352, %362 : vector<4x256xf32>
    %364 = vector.extract_strided_slice %308 {offsets = [0, 32], sizes = [4, 256], strides = [1, 1]} : vector<4x290xf32> to vector<4x256xf32>
    %c1_i32_71 = arith.constant 1 : i32
    %365 = vector.broadcast %c1_i32_71 : i32 to vector<1x256xi32>
    %366 = arith.cmpi sge, %18, %365 : vector<1x256xi32>
    %cst_72 = arith.constant 0.000000e+00 : f32
    %367 = vector.shape_cast %366 : vector<1x256xi1> to vector<1x256xi1>
    %368 = vector.broadcast %367 : vector<1x256xi1> to vector<4x256xi1>
    %369 = vector.broadcast %cst_72 : f32 to vector<4x256xf32>
    %370 = arith.select %368, %364, %369 : vector<4x256xi1>, vector<4x256xf32>
    %371 = vector.extract_strided_slice %305 {offsets = [0, 6], sizes = [4, 1], strides = [1, 1]} : vector<4x9xf32> to vector<4x1xf32>
    %372 = vector.broadcast %371 : vector<4x1xf32> to vector<4x256xf32>
    %373 = arith.mulf %370, %372 : vector<4x256xf32>
    %374 = arith.addf %363, %373 : vector<4x256xf32>
    %375 = vector.extract_strided_slice %308 {offsets = [0, 33], sizes = [4, 256], strides = [1, 1]} : vector<4x290xf32> to vector<4x256xf32>
    %376 = vector.extract_strided_slice %305 {offsets = [0, 7], sizes = [4, 1], strides = [1, 1]} : vector<4x9xf32> to vector<4x1xf32>
    %377 = vector.broadcast %376 : vector<4x1xf32> to vector<4x256xf32>
    %378 = arith.mulf %375, %377 : vector<4x256xf32>
    %379 = arith.addf %374, %378 : vector<4x256xf32>
    %380 = vector.extract_strided_slice %308 {offsets = [0, 34], sizes = [4, 256], strides = [1, 1]} : vector<4x290xf32> to vector<4x256xf32>
    %c14_i32_73 = arith.constant 14 : i32
    %381 = vector.broadcast %c14_i32_73 : i32 to vector<1x256xi32>
    %382 = arith.cmpi sle, %18, %381 : vector<1x256xi32>
    %cst_74 = arith.constant 0.000000e+00 : f32
    %383 = vector.shape_cast %382 : vector<1x256xi1> to vector<1x256xi1>
    %384 = vector.broadcast %383 : vector<1x256xi1> to vector<4x256xi1>
    %385 = vector.broadcast %cst_74 : f32 to vector<4x256xf32>
    %386 = arith.select %384, %380, %385 : vector<4x256xi1>, vector<4x256xf32>
    %387 = vector.extract_strided_slice %305 {offsets = [0, 8], sizes = [4, 1], strides = [1, 1]} : vector<4x9xf32> to vector<4x1xf32>
    %388 = vector.broadcast %387 : vector<4x1xf32> to vector<4x256xf32>
    %389 = arith.mulf %386, %388 : vector<4x256xf32>
    %390 = arith.addf %379, %389 : vector<4x256xf32>
    %391 = vector.broadcast %306 : vector<4x1xf32> to vector<4x256xf32>
    %392 = arith.addf %390, %391 : vector<4x256xf32>
    %c0_75 = arith.constant 0 : index
    %c0_76 = arith.constant 0 : index
    %393 = vector.load %arg12[%c0_75, %c0_76] : memref<4x4xf32, #tpu.memory_space<vmem>>, vector<4x4xf32>
    %c0_77 = arith.constant 0 : index
    %c0_78 = arith.constant 0 : index
    %394 = vector.load %arg13[%c0_77, %c0_78] : memref<4x1xf32, #tpu.memory_space<vmem>>, vector<4x1xf32>
    %cst_79 = arith.constant 0.000000e+00 : f32
    %395 = vector.broadcast %cst_79 : f32 to vector<4x256xf32>
    %396 = vector.extract_strided_slice %392 {offsets = [0, 0], sizes = [1, 256], strides = [1, 1]} : vector<4x256xf32> to vector<1x256xf32>
    %397 = vector.extract_strided_slice %393 {offsets = [0, 0], sizes = [4, 1], strides = [1, 1]} : vector<4x4xf32> to vector<4x1xf32>
    %398 = vector.broadcast %396 : vector<1x256xf32> to vector<4x256xf32>
    %399 = vector.broadcast %397 : vector<4x1xf32> to vector<4x256xf32>
    %400 = arith.mulf %398, %399 : vector<4x256xf32>
    %401 = arith.addf %395, %400 : vector<4x256xf32>
    %402 = vector.extract_strided_slice %392 {offsets = [1, 0], sizes = [1, 256], strides = [1, 1]} : vector<4x256xf32> to vector<1x256xf32>
    %403 = vector.extract_strided_slice %393 {offsets = [0, 1], sizes = [4, 1], strides = [1, 1]} : vector<4x4xf32> to vector<4x1xf32>
    %404 = vector.broadcast %402 : vector<1x256xf32> to vector<4x256xf32>
    %405 = vector.broadcast %403 : vector<4x1xf32> to vector<4x256xf32>
    %406 = arith.mulf %404, %405 : vector<4x256xf32>
    %407 = arith.addf %401, %406 : vector<4x256xf32>
    %408 = vector.extract_strided_slice %392 {offsets = [2, 0], sizes = [1, 256], strides = [1, 1]} : vector<4x256xf32> to vector<1x256xf32>
    %409 = vector.extract_strided_slice %393 {offsets = [0, 2], sizes = [4, 1], strides = [1, 1]} : vector<4x4xf32> to vector<4x1xf32>
    %410 = vector.broadcast %408 : vector<1x256xf32> to vector<4x256xf32>
    %411 = vector.broadcast %409 : vector<4x1xf32> to vector<4x256xf32>
    %412 = arith.mulf %410, %411 : vector<4x256xf32>
    %413 = arith.addf %407, %412 : vector<4x256xf32>
    %414 = vector.extract_strided_slice %392 {offsets = [3, 0], sizes = [1, 256], strides = [1, 1]} : vector<4x256xf32> to vector<1x256xf32>
    %415 = vector.extract_strided_slice %393 {offsets = [0, 3], sizes = [4, 1], strides = [1, 1]} : vector<4x4xf32> to vector<4x1xf32>
    %416 = vector.broadcast %414 : vector<1x256xf32> to vector<4x256xf32>
    %417 = vector.broadcast %415 : vector<4x1xf32> to vector<4x256xf32>
    %418 = arith.mulf %416, %417 : vector<4x256xf32>
    %419 = arith.addf %413, %418 : vector<4x256xf32>
    %420 = vector.broadcast %394 : vector<4x1xf32> to vector<4x256xf32>
    %421 = arith.addf %419, %420 : vector<4x256xf32>
    %cst_80 = arith.constant 3.000000e+00 : f32
    %422 = vector.broadcast %cst_80 : f32 to vector<4x256xf32>
    %423 = arith.addf %421, %422 : vector<4x256xf32>
    %cst_81 = arith.constant 0.000000e+00 : f32
    %cst_82 = arith.constant 6.000000e+00 : f32
    %424 = vector.broadcast %cst_81 : f32 to vector<4x256xf32>
    %425 = arith.maximumf %424, %423 : vector<4x256xf32>
    %426 = vector.broadcast %cst_82 : f32 to vector<4x256xf32>
    %427 = arith.minimumf %426, %425 : vector<4x256xf32>
    %428 = arith.mulf %421, %427 : vector<4x256xf32>
    %cst_83 = arith.constant 0.166666672 : f32
    %429 = vector.broadcast %cst_83 : f32 to vector<4x256xf32>
    %430 = arith.mulf %428, %429 : vector<4x256xf32>
    %431 = vector.extract_strided_slice %1 {offsets = [0, 0], sizes = [1, 256], strides = [1, 1]} : vector<8x256xf32> to vector<1x256xf32>
    %c0_84 = arith.constant 0 : index
    %c0_85 = arith.constant 0 : index
    %c0_86 = arith.constant 0 : index
    %432 = vector.load %arg14[%c0_84, %c0_85, %c0_86] : memref<1x8x256xf32, #tpu.memory_space<vmem>>, vector<1x1x256xf32>
    %433 = vector.shape_cast %432 : vector<1x1x256xf32> to vector<1x256xf32>
    %434 = vector.shape_cast %431 : vector<1x256xf32> to vector<1x1x256xf32>
    tpu.vector_store %arg14[%c0_84, %c0_85, %c0_86], %434 {strides = array<i32>} : memref<1x8x256xf32, #tpu.memory_space<vmem>>, vector<1x1x256xf32>,
    %435 = vector.extract_strided_slice %430 {offsets = [0, 0], sizes = [1, 256], strides = [1, 1]} : vector<4x256xf32> to vector<1x256xf32>
    %c0_87 = arith.constant 0 : index
    %c1 = arith.constant 1 : index
    %c0_88 = arith.constant 0 : index
    %436 = vector.load %arg14[%c0_87, %c1, %c0_88] : memref<1x8x256xf32, #tpu.memory_space<vmem>>, vector<1x1x256xf32>
    %437 = vector.shape_cast %436 : vector<1x1x256xf32> to vector<1x256xf32>
    %438 = vector.shape_cast %435 : vector<1x256xf32> to vector<1x1x256xf32>
    tpu.vector_store %arg14[%c0_87, %c1, %c0_88], %438 {strides = array<i32>} : memref<1x8x256xf32, #tpu.memory_space<vmem>>, vector<1x1x256xf32>,
    %439 = vector.extract_strided_slice %1 {offsets = [1, 0], sizes = [1, 256], strides = [1, 1]} : vector<8x256xf32> to vector<1x256xf32>
    %c0_89 = arith.constant 0 : index
    %c2 = arith.constant 2 : index
    %c0_90 = arith.constant 0 : index
    %440 = vector.load %arg14[%c0_89, %c2, %c0_90] : memref<1x8x256xf32, #tpu.memory_space<vmem>>, vector<1x1x256xf32>
    %441 = vector.shape_cast %440 : vector<1x1x256xf32> to vector<1x256xf32>
    %442 = vector.shape_cast %439 : vector<1x256xf32> to vector<1x1x256xf32>
    tpu.vector_store %arg14[%c0_89, %c2, %c0_90], %442 {strides = array<i32>} : memref<1x8x256xf32, #tpu.memory_space<vmem>>, vector<1x1x256xf32>,
    %443 = vector.extract_strided_slice %430 {offsets = [1, 0], sizes = [1, 256], strides = [1, 1]} : vector<4x256xf32> to vector<1x256xf32>
    %c0_91 = arith.constant 0 : index
    %c3 = arith.constant 3 : index
    %c0_92 = arith.constant 0 : index
    %444 = vector.load %arg14[%c0_91, %c3, %c0_92] : memref<1x8x256xf32, #tpu.memory_space<vmem>>, vector<1x1x256xf32>
    %445 = vector.shape_cast %444 : vector<1x1x256xf32> to vector<1x256xf32>
    %446 = vector.shape_cast %443 : vector<1x256xf32> to vector<1x1x256xf32>
    tpu.vector_store %arg14[%c0_91, %c3, %c0_92], %446 {strides = array<i32>} : memref<1x8x256xf32, #tpu.memory_space<vmem>>, vector<1x1x256xf32>,
    %447 = vector.extract_strided_slice %1 {offsets = [2, 0], sizes = [1, 256], strides = [1, 1]} : vector<8x256xf32> to vector<1x256xf32>
    %c0_93 = arith.constant 0 : index
    %c4 = arith.constant 4 : index
    %c0_94 = arith.constant 0 : index
    %448 = vector.load %arg14[%c0_93, %c4, %c0_94] : memref<1x8x256xf32, #tpu.memory_space<vmem>>, vector<1x1x256xf32>
    %449 = vector.shape_cast %448 : vector<1x1x256xf32> to vector<1x256xf32>
    %450 = vector.shape_cast %447 : vector<1x256xf32> to vector<1x1x256xf32>
    tpu.vector_store %arg14[%c0_93, %c4, %c0_94], %450 {strides = array<i32>} : memref<1x8x256xf32, #tpu.memory_space<vmem>>, vector<1x1x256xf32>,
    %451 = vector.extract_strided_slice %430 {offsets = [2, 0], sizes = [1, 256], strides = [1, 1]} : vector<4x256xf32> to vector<1x256xf32>
    %c0_95 = arith.constant 0 : index
    %c5 = arith.constant 5 : index
    %c0_96 = arith.constant 0 : index
    %452 = vector.load %arg14[%c0_95, %c5, %c0_96] : memref<1x8x256xf32, #tpu.memory_space<vmem>>, vector<1x1x256xf32>
    %453 = vector.shape_cast %452 : vector<1x1x256xf32> to vector<1x256xf32>
    %454 = vector.shape_cast %451 : vector<1x256xf32> to vector<1x1x256xf32>
    tpu.vector_store %arg14[%c0_95, %c5, %c0_96], %454 {strides = array<i32>} : memref<1x8x256xf32, #tpu.memory_space<vmem>>, vector<1x1x256xf32>,
    %455 = vector.extract_strided_slice %1 {offsets = [3, 0], sizes = [1, 256], strides = [1, 1]} : vector<8x256xf32> to vector<1x256xf32>
    %c0_97 = arith.constant 0 : index
    %c6 = arith.constant 6 : index
    %c0_98 = arith.constant 0 : index
    %456 = vector.load %arg14[%c0_97, %c6, %c0_98] : memref<1x8x256xf32, #tpu.memory_space<vmem>>, vector<1x1x256xf32>
    %457 = vector.shape_cast %456 : vector<1x1x256xf32> to vector<1x256xf32>
    %458 = vector.shape_cast %455 : vector<1x256xf32> to vector<1x1x256xf32>
    tpu.vector_store %arg14[%c0_97, %c6, %c0_98], %458 {strides = array<i32>} : memref<1x8x256xf32, #tpu.memory_space<vmem>>, vector<1x1x256xf32>,
    %459 = vector.extract_strided_slice %430 {offsets = [3, 0], sizes = [1, 256], strides = [1, 1]} : vector<4x256xf32> to vector<1x256xf32>
    %c0_99 = arith.constant 0 : index
    %c7 = arith.constant 7 : index
    %c0_100 = arith.constant 0 : index
    %460 = vector.load %arg14[%c0_99, %c7, %c0_100] : memref<1x8x256xf32, #tpu.memory_space<vmem>>, vector<1x1x256xf32>
    %461 = vector.shape_cast %460 : vector<1x1x256xf32> to vector<1x256xf32>
    %462 = vector.shape_cast %459 : vector<1x256xf32> to vector<1x1x256xf32>
    tpu.vector_store %arg14[%c0_99, %c7, %c0_100], %462 {strides = array<i32>} : memref<1x8x256xf32, #tpu.memory_space<vmem>>, vector<1x1x256xf32>,
    return
  }
  func.func @transform_0(%arg0: i32) -> (i32, i32, i32) {
    %c0_i32 = arith.constant 0 : i32
    %c0_i32_0 = arith.constant 0 : i32
    %c0_i32_1 = arith.constant 0 : i32
    return %arg0, %c0_i32, %c0_i32_0 : i32, i32, i32
  }
  func.func @transform_1(%arg0: i32) -> (i32, i32) {
    %c0_i32 = arith.constant 0 : i32
    %c0_i32_0 = arith.constant 0 : i32
    %c0_i32_1 = arith.constant 0 : i32
    return %c0_i32, %c0_i32_0 : i32, i32
  }
  func.func @transform_2(%arg0: i32) -> (i32, i32) {
    %c0_i32 = arith.constant 0 : i32
    %c0_i32_0 = arith.constant 0 : i32
    %c0_i32_1 = arith.constant 0 : i32
    return %c0_i32, %c0_i32_0 : i32, i32
  }
  func.func @transform_3(%arg0: i32) -> (i32, i32) {
    %c0_i32 = arith.constant 0 : i32
    %c0_i32_0 = arith.constant 0 : i32
    %c0_i32_1 = arith.constant 0 : i32
    return %c0_i32, %c0_i32_0 : i32, i32
  }
  func.func @transform_4(%arg0: i32) -> (i32, i32) {
    %c0_i32 = arith.constant 0 : i32
    %c0_i32_0 = arith.constant 0 : i32
    %c0_i32_1 = arith.constant 0 : i32
    return %c0_i32, %c0_i32_0 : i32, i32
  }
  func.func @transform_5(%arg0: i32) -> (i32, i32) {
    %c0_i32 = arith.constant 0 : i32
    %c0_i32_0 = arith.constant 0 : i32
    %c0_i32_1 = arith.constant 0 : i32
    return %c0_i32, %c0_i32_0 : i32, i32
  }
  func.func @transform_6(%arg0: i32) -> (i32, i32) {
    %c0_i32 = arith.constant 0 : i32
    %c0_i32_0 = arith.constant 0 : i32
    %c0_i32_1 = arith.constant 0 : i32
    return %c0_i32, %c0_i32_0 : i32, i32
  }
  func.func @transform_7(%arg0: i32) -> (i32, i32) {
    %c0_i32 = arith.constant 0 : i32
    %c0_i32_0 = arith.constant 0 : i32
    %c0_i32_1 = arith.constant 0 : i32
    return %c0_i32, %c0_i32_0 : i32, i32
  }
  func.func @transform_8(%arg0: i32) -> (i32, i32) {
    %c0_i32 = arith.constant 0 : i32
    %c0_i32_0 = arith.constant 0 : i32
    %c0_i32_1 = arith.constant 0 : i32
    return %c0_i32, %c0_i32_0 : i32, i32
  }
  func.func @transform_9(%arg0: i32) -> (i32, i32) {
    %c0_i32 = arith.constant 0 : i32
    %c0_i32_0 = arith.constant 0 : i32
    %c0_i32_1 = arith.constant 0 : i32
    return %c0_i32, %c0_i32_0 : i32, i32
  }
  func.func @transform_10(%arg0: i32) -> (i32, i32) {
    %c0_i32 = arith.constant 0 : i32
    %c0_i32_0 = arith.constant 0 : i32
    %c0_i32_1 = arith.constant 0 : i32
    return %c0_i32, %c0_i32_0 : i32, i32
  }
  func.func @transform_11(%arg0: i32) -> (i32, i32) {
    %c0_i32 = arith.constant 0 : i32
    %c0_i32_0 = arith.constant 0 : i32
    %c0_i32_1 = arith.constant 0 : i32
    return %c0_i32, %c0_i32_0 : i32, i32
  }
  func.func @transform_12(%arg0: i32) -> (i32, i32) {
    %c0_i32 = arith.constant 0 : i32
    %c0_i32_0 = arith.constant 0 : i32
    %c0_i32_1 = arith.constant 0 : i32
    return %c0_i32, %c0_i32_0 : i32, i32
  }
  func.func @transform_13(%arg0: i32) -> (i32, i32, i32) {
    %c0_i32 = arith.constant 0 : i32
    %c0_i32_0 = arith.constant 0 : i32
    %c0_i32_1 = arith.constant 0 : i32
    return %arg0, %c0_i32, %c0_i32_0 : i32, i32, i32
  }
}

</mosaic_0001>

<bundles_post_ra>
// kernel: _lambda_.1
= control target key start
LH: loop header
LB: loop body
LE: loop exit
PB: predicated region body
PF: predicated region fallthrough
CT: control target
= control target key end

     0   :  { %s1661_s25 = smov 0   ;;  %s2229_s0 = inlined_call_operand.vmem [shape: f32[2,8,256], index: 0, kind: input, shape index: {}]   ;;  %s2230_s1 = inlined_call_operand.vmem [shape: f32[8,9], index: 1, kind: input, shape index: {}]   ;;  %s2231_s2 = inlined_call_operand.vmem [shape: f32[8,1], index: 2, kind: input, shape index: {}]   ;;  %s2232_s3 = inlined_call_operand.vmem [shape: f32[4,8], index: 3, kind: input, shape index: {}]   ;;  %s2233_s4 = inlined_call_operand.vmem [shape: f32[4,1], index: 4, kind: input, shape index: {}]   ;;  %s2234_s5 = inlined_call_operand.vmem [shape: f32[4,9], index: 5, kind: input, shape index: {}]   ;;  %s2235_s6 = inlined_call_operand.vmem [shape: f32[4,1], index: 6, kind: input, shape index: {}]   ;;  %s2236_s7 = inlined_call_operand.vmem [shape: f32[4,4], index: 7, kind: input, shape index: {}]   ;;  %s2237_s8 = inlined_call_operand.vmem [shape: f32[4,1], index: 8, kind: input, shape index: {}]   ;;  %s2238_s9 = inlined_call_operand.vmem [shape: f32[4,9], index: 9, kind: input, shape index: {}]   ;;  %s2239_s10 = inlined_call_operand.vmem [shape: f32[4,1], index: 10, kind: input, shape index: {}]   ;;  %s2240_s11 = inlined_call_operand.vmem [shape: f32[4,4], index: 11, kind: input, shape index: {}]   ;;  %s2241_s12 = inlined_call_operand.vmem [shape: f32[4,1], index: 12, kind: input, shape index: {}]   ;;  %s2242_s13 = inlined_call_operand.vmem [shape: f32[2,8,256], index: 13, kind: output, shape index: {}]  }
   0x1 LB: > { %s1470_s26 = sadd.s32 4294967295, %s1571_s25   ;;  %p1474_p0 = scmp.ge.s32.totalorder %s1571_s25, 1  ;;  %s1571_s25 = sphi %s1661_s25, %s23_s25  }
   0x2   : > { %p387_p1 = scmp.lt.s32.totalorder %s1571_s25, 3 }
   0x4   : > { %p388_p2 = pnand %p1474_p0, %p387_p1 }
   0x5   : > { %p431_p3 = scmp.lt.s32.totalorder (!%p388_p2), %s1470_s26, 1  ;;  %s1576_s19 = smov (!%p388_p2), 17  }
   0x6   : > { %391 = sbr.rel (%p388_p2) target bundleno = 1088 (0x440), region = 72  ;;  %s1582_s20 = smov (!%p388_p2), 126  }
   0x7   : > { %s1583_s21 = smov (!%p388_p2), 112   ;;  %s1584_s22 = smov (!%p388_p2), 110  }
   0x8   : > { %s1586_s23 = smov (!%p388_p2), 96   ;;  %s1587_s24 = smov (!%p388_p2), 94  }
   0x9   : > { %s1588_s28 = smov (!%p388_p2), 127  }
   0xb   : > { %v1672_v0 = vld [vmem:[%s2230_s1] sm:$0xff]  ;;  %v1573_v1 = vmov 0   ;;  %s2254_s26 = smov (!%p431_p3, %s1470_s26), 1  ;;  %v1574_v2 = vmov 4   ;;  %v443_v5 = vlaneseq  ;;  %vm490_vm0 = vcmask 1040384  }
   0xc   : > { %1516 = vset.pattern.permute.xlu1 %v1573_v1  ;;  %s1488_s29 = sshll.u32 %s2254_s26, 4  ;;  %1520 = vset.pattern.permute.xlu0 %v1574_v2  ;;  %vm493_vm1 = vcmask 1041408   ;;  %vm496_vm2 = vcmask 1042432   ;;  %vm499_vm3 = vcmask 1043456   ;;  %vm502_vm4 = vcmask 1044480   ;;  %v471_v54 = vld [vmem:[%s2231_s2] sm:$0xff] }
   0xd   : > { %534 = vperm.xlu1 %1516, %v1672_v0   ;;  %s435_s15 = scalar_lea.vmem %s2229_s0, %s1488_s29  ;;  %v1575_v15 = vmov 1   ;;  %s1699_s18 = scalar_lea.vmem %s2242_s13, %s1488_s29  ;;  %vm1704_vm5 = vcmp.lt.s32.totalorder %v443_v5, 256  ;;  %vm505_vm6 = vcmask 1045504   ;;  %vm508_vm7 = vcmask 1046528  }
   0xe   : > { %v1680_v3 = vld [vmem:[%s435_s15] sm:$0xff]  ;;  %v1682_v4 = vld [vmem:[%s435_s15 + $0x8] sm:$0xff]  ;;  %v1577_v31 = vmov 2   ;;  %v1578_v33 = vmov 7   ;;  %v1579_v34 = vmov 3   ;;  %v1580_v35 = vmov 5  }
   0xf   : > { %v474_v6 = vrot.slane %v1680_v3, 4  ;;  %v478_v7 = vrot.slane %v1680_v3, 3  ;;  %v482_v8 = vrot.slane %v1680_v3, 2  ;;  %1367 = vst [vmem:[#allocation1] sm:$0xff] %v1680_v3  ;;  %v1350_v9 = vrot.slane %v1682_v4, 7  ;;  %1519 = vset.pattern.permute.xlu2 %v1579_v34  ;;  %s1589_s29 = smov 111  }
  0x10   : > { %1368 = vst [vmem:[#allocation1 + $0x9] sm:$0xff] %v1682_v4  ;;  %v475_v10 = vrot.slane %v1682_v4, 4  ;;  %v479_v11 = vrot.slane %v1682_v4, 3  ;;  %v483_v12 = vrot.slane %v1682_v4, 2  ;;  %v486_v13 = vrot.slane %v1680_v3, 1  ;;  %607 = vperm.xlu2 %1519, %v1672_v0   ;;  %s1590_s15 = smov 95  }
  0x11   : > { %v491_v14 = vsel %vm490_vm0, %v474_v6, %v478_v7  ;;  %v1351_v17 = vsel %vm490_vm0, %v1680_v3, %v1350_v9  ;;  %v487_v21 = vrot.slane %v1682_v4, 1  ;;  %v1581_v36 = vmov 6   ;;  %v730_v6 = vld [vmem:[%s2232_s3] sm:$0xf] }
  0x12   : > { %v494_v16 = vsel %vm493_vm1, %v491_v14, %v478_v7  ;;  %v492_v19 = vsel %vm490_vm0, %v475_v10, %v479_v11  ;;  %1357 = vst.msk [vmem:[%s1699_s18] ss:$8 sm:$0x3] %vm1704_vm5, %v1351_v17  ;;  %v1738_v37 = vand.u32 127, %v443_v5  ;;  %vm517_vm8 = vcmask 138240  }
  0x13   : > { %v497_v20 = vsel %vm496_vm2, %v494_v16, %v482_v8  ;;  %v495_v22 = vsel %vm493_vm1, %v492_v19, %v479_v11  ;;  %v1585_v53 = vmov 8   ;;  %vm578_vm11 = vcmask 1031168  }
  0x14   : > { %v500_v23 = vsel %vm499_vm3, %v497_v20, %v482_v8  ;;  %v498_v24 = vsel %vm496_vm2, %v495_v22, %v483_v12  ;;  %v450_v38 = vand.u32 15, %v1738_v37  ;;  %v1742_v39 = vadd.s32 128, %v1738_v37 }
  0x15   : > { %1517 = vset.pattern.permute.xlu1 %v1575_v15  ;;  %v503_v25 = vsel %vm502_vm4, %v500_v23, %v486_v13  ;;  %v501_v26 = vsel %vm499_vm3, %v498_v24, %v483_v12  ;;  %vm599_vm12 = vcmask 916480   ;;  %vm557_vm14 = vcmask 1039360  }
  0x16   : > { %542 = vperm.xlu1 %1517, %v1672_v0   ;;  %v506_v27 = vsel %vm505_vm6, %v503_v25, %v486_v13  ;;  %v504_v29 = vsel %vm502_vm4, %v501_v26, %v487_v21  ;;  %vm1746_vm9 = vcmp.ge.s32.totalorder %v450_v38, 1  ;;  %v457_v45 = vand.u32 15, %v1742_v39 }
  0x17   : > { %v509_v28 = vsel %vm508_vm7, %v506_v27, %v1680_v3  ;;  %v507_v30 = vsel %vm505_vm6, %v504_v29, %v487_v21  ;;  %vm1849_vm13 = vcmp.le.s32.totalorder %v450_v38, 14  ;;  %vm643_vm15 = vcmask 900096  }
  0x18   : > { %513 = vrot.lane.b32.xlu0 %v509_v28, %s1576_s19  ;;  %v510_v32 = vsel %vm508_vm7, %v507_v30, %v1682_v4  ;;  %1521 = vset.pattern.permute.xlu2 %v1580_v35  ;;  %vm1763_vm10 = vcmp.ge.s32.totalorder %v457_v45, 1  ;;  %vm1878_vm1 = vcmp.le.s32.totalorder %v457_v45, 14  ;;  %vm630_vm2 = vcmask 908288  }
  0x19   : > { %651 = vperm.xlu2 %1521, %v1672_v0   ;;  %vm664_vm3 = vcmask 785408   ;;  %vm708_vm4 = vcmask 769024   ;;  %vm695_vm6 = vcmask 777216  }
  0x1e   : > { %1518 = vset.pattern.permute.xlu1 %v1577_v31 }
  0x1f   : > { %586 = vperm.xlu1 %1518, %v1672_v0  }
  0x20   : > { %515 = vrot.lane.b32.xlu0 %v510_v32, %s1576_s19 }
  0x21   : > { %1526 = vset.pattern.permute.xlu2 %v1573_v1 }
  0x27   : > { %1523 = vset.pattern.permute.xlu1 %v1578_v33 }
  0x28   : > { %680 = vperm.xlu1 %1523, %v1672_v0   ;;  %615 = vperm.xlu0 %1520, %v1672_v0  }
  0x30   : > { %1525 = vset.pattern.permute.xlu1 %v1573_v1  ;;  %1522 = vset.pattern.permute.xlu0 %v1581_v36 }
  0x31   : > { %672 = vperm.xlu0 %1522, %v1672_v0  }
  0x39   : > { %1524 = vset.pattern.permute.xlu0 %v1585_v53 }
  0x6a   : > { %v1827_v9 = vpop.permute.xlu2 %607 }
  0x73   : > { %v1835_v11 = vpop.permute.xlu2 %651 }
  0x7f   : > { %v535_v43 = vpop.permute.xlu1 %534 }
  0x88   : > { %v543_v55 = vpop.permute.xlu1 %542 }
  0x8a   : > { %v514_v41 = vpop.permute.xlu0 %513 }
  0x8b   : > { %v1751_v42 = vsel %vm517_vm8, 0.0, %v514_v41 }
  0x8c   : > { %572 = vrot.lane.b32.xlu1 %v1751_v42, %s1582_s20  ;;  %v530_v44 = vsel %vm1746_vm9, %v1751_v42, 0.0  ;;  %v545_v59 = vmul.f32 %v543_v55, %v1751_v42 }
  0x8d   : > { %v1759_v46 = vmul.f32 %v535_v43, %v530_v44 }
  0x91   : > { %v1807_v60 = vpop.permute.xlu1 %586 }
  0x92   : > { %v516_v48 = vpop.permute.xlu0 %515 }
  0x93   : > { %v518_v49 = vsel %vm517_vm8, %v514_v41, %v516_v48  ;;  %v1769_v50 = vsel %vm517_vm8, %v516_v48, 0.0 }
  0x94   : > { %597 = vrot.lane.b32.xlu1 %v1769_v50, %s1583_s21  ;;  %576 = vrot.lane.b32.xlu0 %v1769_v50, %s1582_s20  ;;  %v531_v51 = vsel %vm1763_vm10, %v518_v49, 0.0  ;;  %v547_v58 = vmul.f32 %v543_v55, %v1769_v50  ;;  %v546_v62 = vmul.f32 %v543_v55, %v518_v49 }
  0x95   : > { %574 = vrot.lane.b32.xlu2 %v518_v49, %s1582_s20  ;;  %v1778_v52 = vmul.f32 %v535_v43, %v531_v51 }
  0x9a   : > { %v616_v56 = vpop.permute.xlu0 %615  ;;  %v681_v63 = vpop.permute.xlu1 %680 }
  0x9b   : > { %v618_v57 = vmul.f32 %v616_v56, %v1751_v42  ;;  %v620_v61 = vmul.f32 %v616_v56, %v1769_v50  ;;  %v684_v5 = vmul.f32 %v681_v63, %v518_v49  ;;  %v619_v7 = vmul.f32 %v616_v56, %v518_v49 }
  0x9c   : > { %641 = vrot.lane.b32.xlu1 %v1769_v50, %s1584_s22  ;;  %595 = vrot.lane.b32.xlu0 %v518_v49, %s1583_s21  ;;  %v683_v8 = vmul.f32 %v681_v63, %v1751_v42  ;;  %v685_v10 = vmul.f32 %v681_v63, %v1769_v50 }
  0x9d   : > { %593 = vrot.lane.b32.xlu2 %v1751_v42, %s1583_s21 }
  0xa3   : > { %v1839_v14 = vpop.permute.xlu0 %672 }
  0xa4   : > { %660 = vrot.lane.b32.xlu1 %v518_v49, %s1586_s23  ;;  %639 = vrot.lane.b32.xlu0 %v518_v49, %s1584_s22 }
  0xa5   : > { %637 = vrot.lane.b32.xlu2 %v1751_v42, %s1584_s22 }
  0xac   : > { %704 = vrot.lane.b32.xlu1 %v518_v49, %s1587_s24  ;;  %658 = vrot.lane.b32.xlu0 %v1751_v42, %s1586_s23 }
  0xad   : > { %662 = vrot.lane.b32.xlu2 %v1769_v50, %s1586_s23 }
  0xb4   : > { %725 = vperm.xlu1 %1525, %v471_v54   ;;  %702 = vrot.lane.b32.xlu0 %v1751_v42, %s1587_s24 }
  0xb5   : > { %706 = vrot.lane.b32.xlu2 %v1769_v50, %s1587_s24 }
  0xbc   : > { %555 = vrot.lane.b32.xlu0 %v547_v58, %s1588_s28  ;;  %624 = vrot.lane.b32.xlu1 %v618_v57, %s1589_s29  ;;  %v1872_v57 = vld [vmem:[%s2234_s5] sm:$0xf] }
  0xbd   : > { %551 = vrot.lane.b32.xlu2 %v545_v59, %s1588_s28  ;;  %1527 = vset.pattern.permute.xlu1 %v1575_v15 }
  0xc4   : > { %716 = vperm.xlu0 %1524, %v1672_v0   ;;  %628 = vrot.lane.b32.xlu1 %v620_v61, %s1589_s29  ;;  %v731_v0 = vld [vmem:[%s2233_s4] sm:$0xf] }
  0xc5   : > { %553 = vrot.lane.b32.xlu2 %v546_v62, %s1588_s28 }
  0xcc   : > { %691 = vrot.lane.b32.xlu1 %v684_v5, %s1590_s15  ;;  %1529 = vset.pattern.permute.xlu0 %v1579_v34 }
  0xcd   : > { %736 = vperm.xlu2 %1526, %v730_v6   ;;  %766 = vperm.xlu0 %1529, %v730_v6  }
  0xd4   : > { %746 = vperm.xlu1 %1527, %v730_v6  }
  0xd5   : > { %626 = vrot.lane.b32.xlu2 %v619_v7, %s1589_s29  ;;  %1534 = vset.pattern.permute.xlu0 %v1573_v1 }
  0xd6   : > { %1528 = vset.pattern.permute.xlu2 %v1577_v31  ;;  %815 = vperm.xlu0 %1534, %v731_v0  }
  0xdc   : > { %1530 = vset.pattern.permute.xlu1 %v1574_v2 }
  0xdd   : > { %689 = vrot.lane.b32.xlu2 %v683_v8, %s1590_s15  ;;  %776 = vperm.xlu1 %1530, %v730_v6  }
  0xde   : > { %1537 = vset.pattern.permute.xlu0 %v1577_v31 }
  0xdf   : > { %892 = vperm.xlu0 %1537, %v1872_v57  }
  0xe5   : > { %693 = vrot.lane.b32.xlu2 %v685_v10, %s1590_s15  ;;  %1532 = vset.pattern.permute.xlu1 %v1581_v36 }
  0xe6   : > { %796 = vperm.xlu1 %1532, %v730_v6  }
  0xe7   : > { %1539 = vset.pattern.permute.xlu0 %v1574_v2 }
  0xe8   : > { %920 = vperm.xlu0 %1539, %v1872_v57  }
  0xed   : > { %756 = vperm.xlu2 %1528, %v730_v6  }
  0xee   : > { %1535 = vset.pattern.permute.xlu1 %v1573_v1 }
  0xef   : > { %v575_v12 = vpop.permute.xlu2 %574  ;;  %848 = vperm.xlu1 %1535, %v1872_v57  }
  0xf0   : > { %1541 = vset.pattern.permute.xlu0 %v1580_v35 }
  0xf1   : > { %954 = vperm.xlu0 %1541, %v1872_v57  }
  0xf5   : > { %1531 = vset.pattern.permute.xlu2 %v1580_v35 }
  0xf6   : > { %786 = vperm.xlu2 %1531, %v730_v6  }
  0xf7   : > { %v594_v13 = vpop.permute.xlu2 %593 }
  0xf9   : > { %1543 = vset.pattern.permute.xlu0 %v1585_v53 }
  0xfe   : > { %1533 = vset.pattern.permute.xlu2 %v1578_v33  ;;  %v573_v16 = vpop.permute.xlu1 %572 }
  0xff   : > { %v638_v17 = vpop.permute.xlu2 %637  ;;  %806 = vperm.xlu2 %1533, %v730_v6   ;;  %v579_v29 = vsel %vm578_vm11, %v573_v16, %v575_v12 }
 0x100   : > { %v583_v32 = vsel %vm1849_vm13, %v579_v29, 0.0 }
 0x101   : > { %v589_v38 = vmul.f32 %v1807_v60, %v583_v32 }
 0x106   : > { %v598_v19 = vpop.permute.xlu1 %597  ;;  %v577_v20 = vpop.permute.xlu0 %576 }
 0x107   : > { %v1842_v21 = vpop.permute.xlu2 %662  ;;  %1536 = vset.pattern.permute.xlu2 %v1575_v15  ;;  %v580_v58 = vsel %vm578_vm11, %v575_v12, %v577_v20 }
 0x108   : > { %856 = vperm.xlu2 %1536, %v1872_v57   ;;  %v584_v61 = vsel %vm1878_vm1, %v580_v58, 0.0 }
 0x109   : > { %v590_v7 = vmul.f32 %v1807_v60, %v584_v61 }
 0x10e   : > { %v642_v22 = vpop.permute.xlu1 %641  ;;  %v596_v23 = vpop.permute.xlu0 %595 }
 0x10f   : > { %v1845_v24 = vpop.permute.xlu2 %706  ;;  %v600_v30 = vsel %vm599_vm12, %v594_v13, %v596_v23  ;;  %v601_v62 = vsel %vm599_vm12, %v596_v23, %v598_v19 }
 0x110   : > { %v604_v44 = vsel %vm1746_vm9, %v600_v30, 0.0  ;;  %v605_v10 = vsel %vm1763_vm10, %v601_v62, 0.0  ;;  %1538 = vset.pattern.permute.xlu2 %v1579_v34 }
 0x111   : > { %v610_v49 = vmul.f32 %v1827_v9, %v604_v44  ;;  %912 = vperm.xlu2 %1538, %v1872_v57  }
 0x116   : > { %v661_v25 = vpop.permute.xlu1 %660  ;;  %v640_v26 = vpop.permute.xlu0 %639 }
 0x117   : > { %v552_v27 = vpop.permute.xlu2 %551  ;;  %v644_v59 = vsel %vm643_vm15, %v638_v17, %v640_v26  ;;  %v645_v16 = vsel %vm643_vm15, %v640_v26, %v642_v22  ;;  %v666_v29 = vsel %vm664_vm3, %v661_v25, %v1842_v21 }
 0x118   : > { %v648_v63 = vsel %vm1849_vm13, %v644_v59, 0.0  ;;  %v649_v19 = vsel %vm1878_vm1, %v645_v16, 0.0 }
 0x119   : > { %v654_v12 = vmul.f32 %v1835_v11, %v648_v63  ;;  %v655_v30 = vmul.f32 %v1835_v11, %v649_v19  ;;  %1540 = vset.pattern.permute.xlu2 %v1578_v33 }
 0x11a   : > { %982 = vperm.xlu2 %1540, %v1872_v57  }
 0x11e   : > { %v1857_v41 = vpop.permute.xlu1 %704  ;;  %v659_v42 = vpop.permute.xlu0 %658 }
 0x11f   : > { %v554_v43 = vpop.permute.xlu2 %553  ;;  %v665_v20 = vsel %vm664_vm3, %v659_v42, %v661_v25  ;;  %v710_v42 = vsel %vm708_vm4, %v1857_v41, %v1845_v24 }
 0x120   : > { %v558_v37 = vsel %vm557_vm14, %v552_v27, %v554_v43 }
 0x121   : > { %v562_v48 = vadd.f32 %v558_v37, %v1759_v46 }
 0x122   : > { %1542 = vset.pattern.permute.xlu2 %v1581_v36 }
 0x123   : > { %v591_v50 = vadd.f32 %v589_v38, %v562_v48  ;;  %974 = vperm.xlu2 %1542, %v1872_v57  }
 0x125   : > { %v612_v51 = vadd.f32 %v610_v49, %v591_v50 }
 0x126   : > { %v1865_v54 = vpop.permute.xlu1 %725  ;;  %v703_v55 = vpop.permute.xlu0 %702 }
 0x127   : > { %v1867_v56 = vpop.permute.xlu2 %736  ;;  %v709_v11 = vsel %vm708_vm4, %v703_v55, %v1857_v41  ;;  %v714_v55 = vsel %vm1878_vm1, %v710_v42, 0.0 }
 0x128   : > { %v713_v49 = vsel %vm1849_vm13, %v709_v11, 0.0 }
 0x12b   : > { %1544 = vset.pattern.permute.xlu2 %v1573_v1 }
 0x12e   : > { %v625_v39 = vpop.permute.xlu1 %624  ;;  %v556_v45 = vpop.permute.xlu0 %555 }
 0x12f   : > { %v627_v5 = vpop.permute.xlu2 %626  ;;  %v559_v6 = vsel %vm557_vm14, %v554_v43, %v556_v45  ;;  %v670_v43 = vsel %vm1763_vm10, %v666_v29, 0.0 }
 0x130   : > { %v631_v0 = vsel %vm630_vm2, %v625_v39, %v627_v5  ;;  %v563_v8 = vadd.f32 %v559_v6, %v1778_v52  ;;  %v611_v52 = vmul.f32 %v1827_v9, %v605_v10  ;;  %v669_v9 = vsel %vm1746_vm9, %v665_v20, 0.0 }
 0x131   : > { %v635_v13 = vadd.f32 %v631_v0, %v612_v51  ;;  %v675_v21 = vmul.f32 %v1839_v14, %v669_v9  ;;  %v676_v25 = vmul.f32 %v1839_v14, %v670_v43 }
 0x132   : > { %v592_v17 = vadd.f32 %v590_v7, %v563_v8 }
 0x133   : > { %v656_v60 = vadd.f32 %v654_v12, %v635_v13 }
 0x134   : > { %v613_v27 = vadd.f32 %v611_v52, %v592_v17 }
 0x135   : > { %v677_v48 = vadd.f32 %v675_v21, %v656_v60 }
 0x136   : > { %v629_v23 = vpop.permute.xlu1 %628  ;;  %v717_v37 = vpop.permute.xlu0 %716 }
 0x137   : > { %v690_v22 = vpop.permute.xlu2 %689  ;;  %v632_v26 = vsel %vm630_vm2, %v627_v5, %v629_v23  ;;  %v719_v59 = vmul.f32 %v717_v37, %v713_v49  ;;  %v720_v62 = vmul.f32 %v717_v37, %v714_v55 }
 0x138   : > { %v636_v32 = vadd.f32 %v632_v26, %v613_v27 }
 0x13a   : > { %v657_v44 = vadd.f32 %v655_v30, %v636_v32 }
 0x13c   : > { %v678_v51 = vadd.f32 %v676_v25, %v657_v44 }
 0x13e   : > { %v692_v38 = vpop.permute.xlu1 %691 }
 0x13f   : > { %v694_v50 = vpop.permute.xlu2 %693  ;;  %v696_v58 = vsel %vm695_vm6, %v690_v22, %v692_v38  ;;  %v767_v22 = vpop.permute.xlu0 %766 }
 0x140   : > { %v697_v14 = vsel %vm695_vm6, %v692_v38, %v694_v50  ;;  %v700_v61 = vadd.f32 %v696_v58, %v677_v48 }
 0x141   : > { %v701_v63 = vadd.f32 %v697_v14, %v678_v51 }
 0x142   : > { %v721_v24 = vadd.f32 %v719_v59, %v700_v61 }
 0x143   : > { %v722_v41 = vadd.f32 %v720_v62, %v701_v63 }
 0x144   : > { %v728_v39 = vadd.f32 %v1865_v54, %v721_v24 }
 0x145   : > { %v729_v45 = vadd.f32 %v1865_v54, %v722_v41 }
 0x146   : > { %v747_v5 = vpop.permute.xlu1 %746  ;;  %v732_v6 = vperm.slane %v728_v39, 0  ;;  %v743_v7 = vperm.slane %v728_v39, 1  ;;  %v753_v60 = vperm.slane %v728_v39, 2  ;;  %v763_v27 = vperm.slane %v728_v39, 3 }
 0x147   : > { %v733_v0 = vperm.slane %v729_v45, 0  ;;  %v744_v8 = vperm.slane %v729_v45, 1  ;;  %v757_v10 = vpop.permute.xlu2 %756  ;;  %v754_v52 = vperm.slane %v729_v45, 2  ;;  %v764_v29 = vperm.slane %v729_v45, 3 }
 0x148   : > { %v739_v12 = vmul.f32 %v1867_v56, %v732_v6  ;;  %v749_v13 = vmul.f32 %v747_v5, %v743_v7  ;;  %v759_v23 = vmul.f32 %v757_v10, %v753_v60  ;;  %v773_v9 = vperm.slane %v728_v39, 4 }
 0x149   : > { %v740_v16 = vmul.f32 %v1867_v56, %v733_v0  ;;  %v750_v17 = vmul.f32 %v747_v5, %v744_v8  ;;  %v760_v54 = vmul.f32 %v757_v10, %v754_v52  ;;  %v774_v43 = vperm.slane %v729_v45, 4 }
 0x14a   : > { %v751_v19 = vadd.f32 %v749_v13, %v739_v12  ;;  %v769_v21 = vmul.f32 %v767_v22, %v763_v27  ;;  %v770_v56 = vmul.f32 %v767_v22, %v764_v29  ;;  %v783_v38 = vperm.slane %v728_v39, 5  ;;  %v816_v12 = vpop.permute.xlu0 %815 }
 0x14b   : > { %v752_v20 = vadd.f32 %v750_v17, %v740_v16  ;;  %v784_v48 = vperm.slane %v729_v45, 5  ;;  %v793_v55 = vperm.slane %v728_v39, 6  ;;  %v794_v59 = vperm.slane %v729_v45, 6 }
 0x14c   : > { %v761_v26 = vadd.f32 %v759_v23, %v751_v19  ;;  %v803_v14 = vperm.slane %v728_v39, 7  ;;  %v804_v61 = vperm.slane %v729_v45, 7 }
 0x14d   : > { %v762_v30 = vadd.f32 %v760_v54, %v752_v20 }
 0x14e   : > { %v771_v42 = vadd.f32 %v769_v21, %v761_v26 }
 0x14f   : > { %v777_v32 = vpop.permute.xlu1 %776  ;;  %v772_v37 = vadd.f32 %v770_v56, %v762_v30 }
 0x150   : > { %v787_v44 = vpop.permute.xlu2 %786  ;;  %v779_v11 = vmul.f32 %v777_v32, %v773_v9  ;;  %v780_v25 = vmul.f32 %v777_v32, %v774_v43 }
 0x151   : > { %v789_v51 = vmul.f32 %v787_v44, %v783_v38  ;;  %v790_v58 = vmul.f32 %v787_v44, %v784_v48 }
 0x152   : > { %v781_v49 = vadd.f32 %v779_v11, %v771_v42  ;;  %v782_v50 = vadd.f32 %v780_v25, %v772_v37 }
 0x154   : > { %v791_v24 = vadd.f32 %v789_v51, %v781_v49  ;;  %v792_v41 = vadd.f32 %v790_v58, %v782_v50  ;;  %v1968_v50 = vpop.permute.xlu0 %892 }
 0x158   : > { %v797_v62 = vpop.permute.xlu1 %796 }
 0x159   : > { %v807_v63 = vpop.permute.xlu2 %806  ;;  %v799_v5 = vmul.f32 %v797_v62, %v793_v55  ;;  %v800_v6 = vmul.f32 %v797_v62, %v794_v59  ;;  %v1030_v62 = vld [vmem:[%s2236_s7] sm:$0xf] }
 0x15a   : > { %v809_v7 = vmul.f32 %v807_v63, %v803_v14  ;;  %v810_v0 = vmul.f32 %v807_v63, %v804_v61 }
 0x15b   : > { %v801_v8 = vadd.f32 %v799_v5, %v791_v24  ;;  %v802_v10 = vadd.f32 %v800_v6, %v792_v41  ;;  %v831_v41 = vld [vmem:[%s2235_s6] sm:$0xf] }
 0x15c   : > { %v921_v55 = vpop.permute.xlu0 %920  ;;  %v1031_v5 = vld [vmem:[%s2237_s8] sm:$0xf] }
 0x15d   : > { %v811_v13 = vadd.f32 %v809_v7, %v801_v8  ;;  %v812_v16 = vadd.f32 %v810_v0, %v802_v10 }
 0x15f   : > { %v818_v17 = vadd.f32 %v816_v12, %v811_v13  ;;  %v819_v60 = vadd.f32 %v816_v12, %v812_v16 }
 0x161   : > { %v820_v52 = vadd.f32 3.0, %v818_v17  ;;  %v821_v19 = vadd.f32 3.0, %v819_v60  ;;  %v849_v21 = vpop.permute.xlu1 %848 }
 0x162   : > { %v857_v26 = vpop.permute.xlu2 %856 }
 0x163   : > { %v822_v20 = vmax.f32 %v820_v52, 0.0  ;;  %v823_v39 = vmax.f32 %v821_v19, 0.0 }
 0x164   : > { %v1999_v10 = vpop.permute.xlu0 %954 }
 0x165   : > { %v824_v45 = vmin.f32 %v822_v20, 6.0  ;;  %v825_v23 = vmin.f32 %v823_v39, 6.0 }
 0x167   : > { %v826_v54 = vmul.f32 %v824_v45, %v818_v17  ;;  %v827_v27 = vmul.f32 %v825_v23, %v819_v60 }
 0x169   : > { %v829_v29 = vmul.f32 0.16666667, %v827_v27  ;;  %v828_v22 = vmul.f32 0.16666667, %v826_v54 }
 0x16b   : > { %836 = vrot.lane.b32.xlu2 %v829_v29, %s1576_s19  ;;  %834 = vrot.lane.b32.xlu1 %v828_v22, %s1576_s19  ;;  %v1941_v30 = vpop.permute.xlu2 %912 }
 0x174   : > { %v983_v32 = vpop.permute.xlu2 %982 }
 0x17d   : > { %v1943_v9 = vpop.permute.xlu2 %974 }
 0x1c5   : > { %v837_v43 = vpop.permute.xlu2 %836 }
 0x1c6   : > { %v843_v44 = vsel %vm517_vm8, %v837_v43, 0.0 }
 0x1c7   : > { %883 = vrot.lane.b32.xlu2 %v843_v44, %s1582_s20  ;;  %v861_v58 = vmul.f32 %v857_v26, %v843_v44  ;;  %v925_v59 = vmul.f32 %v921_v55, %v843_v44  ;;  %v987_v14 = vmul.f32 %v983_v32, %v843_v44 }
 0x1dd   : > { %v835_v56 = vpop.permute.xlu1 %834 }
 0x1de   : > { %v838_v11 = vsel %vm517_vm8, %v835_v56, %v837_v43  ;;  %v842_v25 = vsel %vm517_vm8, 0.0, %v835_v56 }
 0x1df   : > { %879 = vrot.lane.b32.xlu0 %v842_v25, %s1582_s20  ;;  %901 = vrot.lane.b32.xlu2 %v838_v11, %s1583_s21  ;;  %v844_v42 = vsel %vm1746_vm9, %v842_v25, 0.0  ;;  %v845_v38 = vsel %vm1763_vm10, %v838_v11, 0.0  ;;  %v859_v49 = vmul.f32 %v857_v26, %v842_v25  ;;  %v985_v51 = vmul.f32 %v983_v32, %v842_v25 }
 0x1e0   : > { %881 = vrot.lane.b32.xlu1 %v838_v11, %s1582_s20  ;;  %v1954_v37 = vmul.f32 %v849_v21, %v844_v42  ;;  %v1958_v48 = vmul.f32 %v849_v21, %v845_v38  ;;  %v860_v61 = vmul.f32 %v857_v26, %v838_v11  ;;  %v923_v63 = vmul.f32 %v921_v55, %v842_v25 }
 0x1e1   : > { %v986_v24 = vmul.f32 %v983_v32, %v838_v11 }
 0x1e7   : > { %941 = vrot.lane.b32.xlu0 %v842_v25, %s1584_s22  ;;  %945 = vrot.lane.b32.xlu2 %v843_v44, %s1584_s22 }
 0x1e8   : > { %899 = vrot.lane.b32.xlu1 %v842_v25, %s1583_s21 }
 0x1ef   : > { %1003 = vrot.lane.b32.xlu0 %v842_v25, %s1587_s24  ;;  %963 = vrot.lane.b32.xlu2 %v838_v11, %s1586_s23 }
 0x1f0   : > { %903 = vrot.lane.b32.xlu1 %v843_v44, %s1583_s21 }
 0x1f7   : > { %865 = vrot.lane.b32.xlu0 %v859_v49, %s1588_s28  ;;  %1007 = vrot.lane.b32.xlu2 %v843_v44, %s1587_s24 }
 0x1f8   : > { %943 = vrot.lane.b32.xlu1 %v838_v11, %s1584_s22 }
 0x1ff   : > { %991 = vrot.lane.b32.xlu0 %v985_v51, %s1590_s15  ;;  %869 = vrot.lane.b32.xlu2 %v861_v58, %s1588_s28 }
 0x200   : > { %961 = vrot.lane.b32.xlu1 %v842_v25, %s1586_s23 }
 0x207   : > { %933 = vrot.lane.b32.xlu2 %v925_v59, %s1589_s29  ;;  %1016 = vperm.xlu0 %1543, %v1872_v57   ;;  %v924_v57 = vmul.f32 %v921_v55, %v838_v11 }
 0x208   : > { %965 = vrot.lane.b32.xlu1 %v843_v44, %s1586_s23 }
 0x20f   : > { %995 = vrot.lane.b32.xlu2 %v987_v14, %s1590_s15  ;;  %1547 = vset.pattern.permute.xlu0 %v1579_v34 }
 0x210   : > { %1005 = vrot.lane.b32.xlu1 %v838_v11, %s1587_s24  ;;  %1066 = vperm.xlu0 %1547, %v1030_v62  }
 0x217   : > { %1036 = vperm.xlu2 %1544, %v1030_v62  }
 0x218   : > { %867 = vrot.lane.b32.xlu1 %v860_v61, %s1588_s28  ;;  %1550 = vset.pattern.permute.xlu0 %v1575_v15 }
 0x21f   : > { %1546 = vset.pattern.permute.xlu2 %v1577_v31 }
 0x220   : > { %929 = vrot.lane.b32.xlu1 %v923_v63, %s1589_s29  ;;  %1056 = vperm.xlu2 %1546, %v1030_v62  }
 0x221   : > { %v884_v7 = vpop.permute.xlu2 %883 }
 0x228   : > { %931 = vrot.lane.b32.xlu1 %v924_v57, %s1589_s29  ;;  %1549 = vset.pattern.permute.xlu2 %v1573_v1 }
 0x230   : > { %993 = vrot.lane.b32.xlu1 %v986_v24, %s1590_s15 }
 0x238   : > { %1025 = vperm.xlu1 %1535, %v831_v41  }
 0x239   : > { %v902_v8 = vpop.permute.xlu2 %901 }
 0x240   : > { %1545 = vset.pattern.permute.xlu1 %v1575_v15 }
 0x241   : > { %1046 = vperm.xlu1 %1545, %v1030_v62   ;;  %v946_v16 = vpop.permute.xlu2 %945 }
 0x249   : > { %1548 = vset.pattern.permute.xlu1 %v1573_v1  ;;  %v964_v52 = vpop.permute.xlu2 %963 }
 0x24a   : > { %1075 = vperm.xlu1 %1548, %v1031_v5  }
 0x251   : > { %v880_v17 = vpop.permute.xlu0 %879  ;;  %v2001_v39 = vpop.permute.xlu2 %1007 }
 0x252   : > { %v882_v6 = vpop.permute.xlu1 %881  ;;  %1551 = vset.pattern.permute.xlu1 %v1574_v2  ;;  %v2010_v2 = vld [vmem:[%s2238_s9] sm:$0xf] }
 0x253   : > { %1108 = vperm.xlu2 %1549, %v2010_v2   ;;  %1116 = vperm.xlu0 %1550, %v2010_v2   ;;  %v886_v54 = vsel %vm578_vm11, %v882_v6, %v884_v7  ;;  %v885_v27 = vsel %vm578_vm11, %v880_v17, %v882_v6 }
 0x254   : > { %1180 = vperm.xlu1 %1551, %v2010_v2   ;;  %v890_v22 = vsel %vm1878_vm1, %v886_v54, 0.0  ;;  %v889_v26 = vsel %vm1849_vm13, %v885_v27, 0.0 }
 0x255   : > { %v896_v25 = vmul.f32 %v1968_v50, %v890_v22  ;;  %v895_v42 = vmul.f32 %v1968_v50, %v889_v26 }
 0x259   : > { %v942_v19 = vpop.permute.xlu0 %941  ;;  %v870_v32 = vpop.permute.xlu2 %869 }
 0x25a   : > { %v900_v0 = vpop.permute.xlu1 %899 }
 0x25b   : > { %v905_v29 = vsel %vm599_vm12, %v900_v0, %v902_v8  ;;  %1552 = vset.pattern.permute.xlu2 %v1578_v33  ;;  %1555 = vset.pattern.permute.xlu0 %v1580_v35 }
 0x25c   : > { %v909_v21 = vsel %vm1746_vm9, %v905_v29, 0.0  ;;  %1242 = vperm.xlu2 %1552, %v2010_v2   ;;  %1553 = vset.pattern.permute.xlu1 %v1577_v31 }
 0x25d   : > { %v915_v51 = vmul.f32 %v1941_v30, %v909_v21  ;;  %1152 = vperm.xlu1 %1553, %v2010_v2   ;;  %1214 = vperm.xlu0 %1555, %v2010_v2  }
 0x261   : > { %v2003_v45 = vpop.permute.xlu0 %1003  ;;  %v934_v35 = vpop.permute.xlu2 %933 }
 0x262   : > { %v904_v12 = vpop.permute.xlu1 %903 }
 0x264   : > { %1554 = vset.pattern.permute.xlu2 %v1579_v34 }
 0x265   : > { %1172 = vperm.xlu2 %1554, %v2010_v2   ;;  %1557 = vset.pattern.permute.xlu0 %v1585_v53 }
 0x266   : > { %1558 = vset.pattern.permute.xlu1 %v1573_v1 }
 0x269   : > { %v866_v43 = vpop.permute.xlu0 %865 }
 0x26a   : > { %v944_v13 = vpop.permute.xlu1 %943 }
 0x26b   : > { %v947_v14 = vsel %vm643_vm15, %v942_v19, %v944_v13  ;;  %v948_v61 = vsel %vm643_vm15, %v944_v13, %v946_v16 }
 0x26c   : > { %v951_v57 = vsel %vm1849_vm13, %v947_v14, 0.0  ;;  %v952_v24 = vsel %vm1878_vm1, %v948_v61, 0.0 }
 0x26d   : > { %1556 = vset.pattern.permute.xlu2 %v1581_v36 }
 0x26e   : > { %1234 = vperm.xlu2 %1556, %v2010_v2  }
 0x271   : > { %v992_v0 = vpop.permute.xlu0 %991 }
 0x272   : > { %v962_v60 = vpop.permute.xlu1 %961 }
 0x276   : > { %1559 = vset.pattern.permute.xlu2 %v1573_v1 }
 0x27a   : > { %v966_v20 = vpop.permute.xlu1 %965 }
 0x27b   : > { %v968_v5 = vsel %vm664_vm3, %v964_v52, %v966_v20 }
 0x27c   : > { %v972_v16 = vsel %vm1763_vm10, %v968_v5, 0.0 }
 0x27d   : > { %v978_v20 = vmul.f32 %v1943_v9, %v972_v16 }
 0x282   : > { %v2005_v23 = vpop.permute.xlu1 %1005 }
 0x283   : > { %v1010_v54 = vsel %vm708_vm4, %v2005_v23, %v2001_v39 }
 0x28a   : > { %v868_v44 = vpop.permute.xlu1 %867 }
 0x28b   : > { %v871_v56 = vsel %vm557_vm14, %v866_v43, %v868_v44  ;;  %v872_v11 = vsel %vm557_vm14, %v868_v44, %v870_v32  ;;  %v1017_v43 = vpop.permute.xlu0 %1016 }
 0x28c   : > { %v875_v38 = vadd.f32 %v871_v56, %v1954_v37  ;;  %v876_v49 = vadd.f32 %v872_v11, %v1958_v48  ;;  %v906_v37 = vsel %vm599_vm12, %v902_v8, %v904_v12  ;;  %v957_v8 = vmul.f32 %v1999_v10, %v951_v57 }
 0x28d   : > { %v910_v33 = vsel %vm1763_vm10, %v906_v37, 0.0  ;;  %v958_v12 = vmul.f32 %v1999_v10, %v952_v24  ;;  %v1009_v10 = vsel %vm708_vm4, %v2003_v45, %v2005_v23 }
 0x28e   : > { %v897_v58 = vadd.f32 %v895_v42, %v875_v38  ;;  %v898_v55 = vadd.f32 %v896_v25, %v876_v49  ;;  %v916_v59 = vmul.f32 %v1941_v30, %v910_v33  ;;  %v967_v30 = vsel %vm664_vm3, %v962_v60, %v964_v52  ;;  %v996_v60 = vpop.permute.xlu2 %995 }
 0x28f   : > { %v971_v13 = vsel %vm1746_vm9, %v967_v30, 0.0  ;;  %v1013_v32 = vsel %vm1849_vm13, %v1009_v10, 0.0 }
 0x290   : > { %v917_v50 = vadd.f32 %v915_v51, %v897_v58  ;;  %v918_v62 = vadd.f32 %v916_v59, %v898_v55  ;;  %v977_v52 = vmul.f32 %v1943_v9, %v971_v13  ;;  %v1014_v9 = vsel %vm1878_vm1, %v1010_v54, 0.0 }
 0x291   : > { %v1019_v21 = vmul.f32 %v1017_v43, %v1013_v32  ;;  %v1020_v56 = vmul.f32 %v1017_v43, %v1014_v9 }
 0x292   : > { %v930_v48 = vpop.permute.xlu1 %929 }
 0x293   : > { %v1067_v57 = vpop.permute.xlu0 %1066 }
 0x296   : > { %v1037_v39 = vpop.permute.xlu2 %1036 }
 0x29a   : > { %v932_v63 = vpop.permute.xlu1 %931 }
 0x29b   : > { %v935_v41 = vsel %vm630_vm2, %v930_v48, %v932_v63  ;;  %v936_v53 = vsel %vm630_vm2, %v932_v63, %v934_v35 }
 0x29c   : > { %v939_v6 = vadd.f32 %v935_v41, %v917_v50  ;;  %v940_v7 = vadd.f32 %v936_v53, %v918_v62 }
 0x29e   : > { %v959_v17 = vadd.f32 %v957_v8, %v939_v6  ;;  %v960_v19 = vadd.f32 %v958_v12, %v940_v7  ;;  %v1057_v48 = vpop.permute.xlu2 %1056 }
 0x2a0   : > { %v979_v22 = vadd.f32 %v977_v52, %v959_v17  ;;  %v980_v26 = vadd.f32 %v978_v20, %v960_v19 }
 0x2a2   : > { %v994_v27 = vpop.permute.xlu1 %993 }
 0x2a3   : > { %v997_v36 = vsel %vm695_vm6, %v992_v0, %v994_v27  ;;  %v998_v29 = vsel %vm695_vm6, %v994_v27, %v996_v60 }
 0x2a4   : > { %v1001_v44 = vadd.f32 %v997_v36, %v979_v22  ;;  %v1002_v45 = vadd.f32 %v998_v29, %v980_v26 }
 0x2a6   : > { %v1021_v11 = vadd.f32 %v1019_v21, %v1001_v44  ;;  %v1022_v25 = vadd.f32 %v1020_v56, %v1002_v45 }
 0x2aa   : > { %v1026_v23 = vpop.permute.xlu1 %1025 }
 0x2ab   : > { %v1028_v42 = vadd.f32 %v1026_v23, %v1021_v11  ;;  %v1029_v38 = vadd.f32 %v1026_v23, %v1022_v25 }
 0x2ad   : > { %v1032_v49 = vperm.slane %v1028_v42, 0  ;;  %v1033_v51 = vperm.slane %v1029_v38, 0  ;;  %v1053_v58 = vperm.slane %v1028_v42, 2  ;;  %v1054_v55 = vperm.slane %v1029_v38, 2  ;;  %v2080_v26 = vpop.permute.xlu2 %1108 }
 0x2ae   : > { %v1043_v50 = vperm.slane %v1028_v42, 1  ;;  %v1044_v37 = vperm.slane %v1029_v38, 1  ;;  %v1063_v33 = vperm.slane %v1028_v42, 3  ;;  %v1064_v35 = vperm.slane %v1029_v38, 3 }
 0x2af   : > { %v1039_v14 = vmul.f32 %v1037_v39, %v1032_v49  ;;  %v1040_v61 = vmul.f32 %v1037_v39, %v1033_v51  ;;  %v1059_v24 = vmul.f32 %v1057_v48, %v1053_v58  ;;  %v1060_v41 = vmul.f32 %v1057_v48, %v1054_v55 }
 0x2b0   : > { %v1069_v5 = vmul.f32 %v1067_v57, %v1063_v33  ;;  %v1070_v6 = vmul.f32 %v1067_v57, %v1064_v35  ;;  %v1091_v33 = vld [vmem:[%s2239_s10] sm:$0xf] }
 0x2b1   : > { %v1290_v35 = vld [vmem:[%s2240_s11] sm:$0xf] }
 0x2b3   : > { %v1047_v59 = vpop.permute.xlu1 %1046 }
 0x2b4   : > { %v1049_v62 = vmul.f32 %v1047_v59, %v1043_v50  ;;  %v1050_v63 = vmul.f32 %v1047_v59, %v1044_v37 }
 0x2b6   : > { %v1051_v53 = vadd.f32 %v1049_v62, %v1039_v14  ;;  %v1052_v30 = vadd.f32 %v1050_v63, %v1040_v61  ;;  %v1243_v32 = vpop.permute.xlu2 %1242 }
 0x2b8   : > { %v1061_v7 = vadd.f32 %v1059_v24, %v1051_v53  ;;  %v1062_v0 = vadd.f32 %v1060_v41, %v1052_v30 }
 0x2ba   : > { %v1071_v8 = vadd.f32 %v1069_v5, %v1061_v7  ;;  %v1072_v12 = vadd.f32 %v1070_v6, %v1062_v0 }
 0x2bc   : > { %v1076_v13 = vpop.permute.xlu1 %1075 }
 0x2bd   : > { %v1078_v16 = vadd.f32 %v1076_v13, %v1071_v8  ;;  %v1079_v17 = vadd.f32 %v1076_v13, %v1072_v12 }
 0x2bf   : > { %v1080_v19 = vadd.f32 3.0, %v1078_v16  ;;  %v1081_v60 = vadd.f32 3.0, %v1079_v17  ;;  %v2082_v9 = vpop.permute.xlu2 %1172 }
 0x2c1   : > { %v1082_v52 = vmax.f32 %v1080_v19, 0.0  ;;  %v1083_v20 = vmax.f32 %v1081_v60, 0.0 }
 0x2c3   : > { %v1084_v10 = vmin.f32 %v1082_v52, 6.0  ;;  %v1085_v54 = vmin.f32 %v1083_v20, 6.0 }
 0x2c5   : > { %v1086_v27 = vmul.f32 %v1084_v10, %v1078_v16  ;;  %v1087_v36 = vmul.f32 %v1085_v54, %v1079_v17  ;;  %v1117_v25 = vpop.permute.xlu0 %1116 }
 0x2c6   : > { %v1181_v21 = vpop.permute.xlu1 %1180 }
 0x2c7   : > { %v1089_v29 = vmul.f32 0.16666667, %v1087_v36  ;;  %v1088_v22 = vmul.f32 0.16666667, %v1086_v27 }
 0x2c8   : > { %v2084_v43 = vpop.permute.xlu2 %1234 }
 0x2c9   : > { %1096 = vrot.lane.b32.xlu1 %v1089_v29, %s1576_s19  ;;  %1094 = vrot.lane.b32.xlu2 %v1088_v22, %s1576_s19 }
 0x2cf   : > { %v2091_v56 = vpop.permute.xlu1 %1152  ;;  %v1215_v14 = vpop.permute.xlu0 %1214 }
 0x323   : > { %v1095_v44 = vpop.permute.xlu2 %1094 }
 0x324   : > { %v2087_v45 = vsel %vm517_vm8, 0.0, %v1095_v44 }
 0x325   : > { %1139 = vrot.lane.b32.xlu1 %v2087_v45, %s1582_s20  ;;  %v1183_v38 = vmul.f32 %v1181_v21, %v2087_v45  ;;  %v1119_v49 = vmul.f32 %v1117_v25, %v2087_v45  ;;  %v1245_v58 = vmul.f32 %v1243_v32, %v2087_v45  ;;  %v1104_v17 = vsel %vm1746_vm9, %v2087_v45, 0.0 }
 0x326   : > { %v1111_v27 = vmul.f32 %v2080_v26, %v1104_v17 }
 0x33b   : > { %v1097_v39 = vpop.permute.xlu1 %1096 }
 0x33c   : > { %v2094_v23 = vsel %vm517_vm8, %v1095_v44, %v1097_v39  ;;  %v1103_v11 = vsel %vm517_vm8, %v1097_v39, 0.0 }
 0x33d   : > { %1143 = vrot.lane.b32.xlu0 %v1103_v11, %s1582_s20  ;;  %1163 = vrot.lane.b32.xlu1 %v1103_v11, %s1583_s21  ;;  %v1121_v42 = vmul.f32 %v1117_v25, %v1103_v11  ;;  %v1120_v51 = vmul.f32 %v1117_v25, %v2094_v23  ;;  %v1184_v55 = vmul.f32 %v1181_v21, %v2094_v23  ;;  %v1370_v25 = vld [vmem:[#allocation1 + $0x1] ss:$9 sm:$0xff] }
 0x33e   : > { %1141 = vrot.lane.b32.xlu2 %v2094_v23, %s1582_s20  ;;  %v1185_v50 = vmul.f32 %v1181_v21, %v1103_v11  ;;  %v1246_v37 = vmul.f32 %v1243_v32, %v2094_v23  ;;  %v1247_v48 = vmul.f32 %v1243_v32, %v1103_v11  ;;  %1480 = vst.msk [vmem:[%s1699_s18 + $0x2] ss:$8 sm:$0x3] %vm1704_vm5, %v1370_v25 }
 0x345   : > { %1203 = vrot.lane.b32.xlu1 %v2094_v23, %s1584_s22  ;;  %1161 = vrot.lane.b32.xlu0 %v2094_v23, %s1583_s21 }
 0x346   : > { %1159 = vrot.lane.b32.xlu2 %v2087_v45, %s1583_s21 }
 0x34d   : > { %1221 = vrot.lane.b32.xlu1 %v2087_v45, %s1586_s23  ;;  %1201 = vrot.lane.b32.xlu0 %v2087_v45, %s1584_s22 }
 0x34e   : > { %1205 = vrot.lane.b32.xlu2 %v1103_v11, %s1584_s22 }
 0x355   : > { %1225 = vrot.lane.b32.xlu1 %v1103_v11, %s1586_s23  ;;  %1263 = vrot.lane.b32.xlu0 %v2087_v45, %s1587_s24 }
 0x356   : > { %1223 = vrot.lane.b32.xlu2 %v2094_v23, %s1586_s23 }
 0x35d   : > { %1265 = vrot.lane.b32.xlu1 %v2094_v23, %s1587_s24  ;;  %1129 = vrot.lane.b32.xlu0 %v1121_v42, %s1588_s28 }
 0x35e   : > { %1267 = vrot.lane.b32.xlu2 %v1103_v11, %s1587_s24 }
 0x365   : > { %1189 = vrot.lane.b32.xlu0 %v1183_v38, %s1589_s29  ;;  %1125 = vrot.lane.b32.xlu1 %v1119_v49, %s1588_s28 }
 0x366   : > { %1127 = vrot.lane.b32.xlu2 %v1120_v51, %s1588_s28 }
 0x36d   : > { %1251 = vrot.lane.b32.xlu0 %v1245_v58, %s1590_s15  ;;  %1191 = vrot.lane.b32.xlu1 %v1184_v55, %s1589_s29 }
 0x36e   : > { %1193 = vrot.lane.b32.xlu2 %v1185_v50, %s1589_s29 }
 0x375   : > { %1276 = vperm.xlu0 %1557, %v2010_v2   ;;  %1253 = vrot.lane.b32.xlu1 %v1246_v37, %s1590_s15  ;;  %v1291_v2 = vld [vmem:[%s2241_s12] sm:$0xf] }
 0x376   : > { %1255 = vrot.lane.b32.xlu2 %v1247_v48, %s1590_s15 }
 0x37d   : > { %1285 = vperm.xlu1 %1558, %v1091_v33   ;;  %1562 = vset.pattern.permute.xlu0 %v1579_v34 }
 0x37e   : > { %1326 = vperm.xlu0 %1562, %v1290_v35   ;;  %1296 = vperm.xlu2 %1559, %v1290_v35  }
 0x385   : > { %1560 = vset.pattern.permute.xlu1 %v1575_v15 }
 0x386   : > { %1306 = vperm.xlu1 %1560, %v1290_v35   ;;  %1561 = vset.pattern.permute.xlu2 %v1577_v31 }
 0x387   : > { %1316 = vperm.xlu2 %1561, %v1290_v35   ;;  %1564 = vset.pattern.permute.xlu0 %v1573_v1 }
 0x38e   : > { %1563 = vset.pattern.permute.xlu1 %v1573_v1  ;;  %v1105_v1 = vsel %vm1763_vm10, %v2094_v23, 0.0 }
 0x38f   : > { %1335 = vperm.xlu1 %1563, %v1291_v2   ;;  %v1112_v19 = vmul.f32 %v2080_v26, %v1105_v1 }
 0x397   : > { %v1140_v34 = vpop.permute.xlu1 %1139 }
 0x398   : > { %v1142_v59 = vpop.permute.xlu2 %1141 }
 0x399   : > { %v1145_v12 = vsel %vm578_vm11, %v1140_v34, %v1142_v59 }
 0x39a   : > { %v1149_v60 = vsel %vm1849_vm13, %v1145_v12, 0.0 }
 0x39b   : > { %v1155_v32 = vmul.f32 %v2091_v56, %v1149_v60 }
 0x3a0   : > { %v1160_v61 = vpop.permute.xlu2 %1159 }
 0x3a8   : > { %v1206_v15 = vpop.permute.xlu2 %1205 }
 0x3af   : > { %v1164_v62 = vpop.permute.xlu1 %1163  ;;  %v1144_v63 = vpop.permute.xlu0 %1143 }
 0x3b0   : > { %v1224_v31 = vpop.permute.xlu2 %1223  ;;  %v1146_v13 = vsel %vm578_vm11, %v1142_v59, %v1144_v63 }
 0x3b1   : > { %v1150_v52 = vsel %vm1878_vm1, %v1146_v13, 0.0 }
 0x3b2   : > { %v1156_v44 = vmul.f32 %v2091_v56, %v1150_v52 }
 0x3b7   : > { %v1204_v57 = vpop.permute.xlu1 %1203  ;;  %v1162_v24 = vpop.permute.xlu0 %1161 }
 0x3b8   : > { %v1268_v6 = vpop.permute.xlu2 %1267  ;;  %v1165_v20 = vsel %vm599_vm12, %v1160_v61, %v1162_v24  ;;  %v1166_v10 = vsel %vm599_vm12, %v1162_v24, %v1164_v62  ;;  %v1208_v26 = vsel %vm643_vm15, %v1204_v57, %v1206_v15 }
 0x3b9   : > { %v1169_v21 = vsel %vm1746_vm9, %v1165_v20, 0.0  ;;  %v1170_v39 = vsel %vm1763_vm10, %v1166_v10, 0.0  ;;  %v1212_v37 = vsel %vm1878_vm1, %v1208_v26, 0.0 }
 0x3ba   : > { %v1175_v38 = vmul.f32 %v2082_v9, %v1169_v21  ;;  %v1176_v56 = vmul.f32 %v2082_v9, %v1170_v39  ;;  %v1218_v61 = vmul.f32 %v1215_v14, %v1212_v37 }
 0x3bf   : > { %v1222_v41 = vpop.permute.xlu1 %1221  ;;  %v1202_v53 = vpop.permute.xlu0 %1201 }
 0x3c0   : > { %v1128_v8 = vpop.permute.xlu2 %1127  ;;  %v1207_v49 = vsel %vm643_vm15, %v1202_v53, %v1204_v57  ;;  %v1227_v2 = vsel %vm664_vm3, %v1222_v41, %v1224_v31 }
 0x3c1   : > { %v1211_v48 = vsel %vm1849_vm13, %v1207_v49, 0.0  ;;  %v1231_v63 = vsel %vm1746_vm9, %v1227_v2, 0.0 }
 0x3c2   : > { %v1217_v62 = vmul.f32 %v1215_v14, %v1211_v48 }
 0x3c7   : > { %v1226_v30 = vpop.permute.xlu1 %1225  ;;  %v1264_v5 = vpop.permute.xlu0 %1263 }
 0x3c8   : > { %v1194_v42 = vpop.permute.xlu2 %1193  ;;  %v1228_v9 = vsel %vm664_vm3, %v1224_v31, %v1226_v30 }
 0x3c9   : > { %v1232_v15 = vsel %vm1763_vm10, %v1228_v9, 0.0 }
 0x3cf   : > { %v1266_v7 = vpop.permute.xlu1 %1265  ;;  %v1130_v0 = vpop.permute.xlu0 %1129 }
 0x3d0   : > { %v1132_v16 = vsel %vm557_vm14, %v1128_v8, %v1130_v0  ;;  %v1256_v53 = vpop.permute.xlu2 %1255  ;;  %v1237_v0 = vmul.f32 %v2084_v43, %v1231_v63  ;;  %v1269_v41 = vsel %vm708_vm4, %v1264_v5, %v1266_v7  ;;  %v1270_v31 = vsel %vm708_vm4, %v1266_v7, %v1268_v6 }
 0x3d1   : > { %v1136_v54 = vadd.f32 %v1132_v16, %v1112_v19  ;;  %v1273_v13 = vsel %vm1849_vm13, %v1269_v41, 0.0  ;;  %v1274_v16 = vsel %vm1878_vm1, %v1270_v31, 0.0 }
 0x3d3   : > { %v1158_v23 = vadd.f32 %v1156_v44, %v1136_v54 }
 0x3d5   : > { %v1178_v55 = vadd.f32 %v1176_v56, %v1158_v23 }
 0x3d7   : > { %v1126_v36 = vpop.permute.xlu1 %1125  ;;  %v1190_v29 = vpop.permute.xlu0 %1189 }
 0x3d8   : > { %v1131_v22 = vsel %vm557_vm14, %v1126_v36, %v1128_v8  ;;  %v1238_v8 = vmul.f32 %v2084_v43, %v1232_v15  ;;  %v1297_v60 = vpop.permute.xlu2 %1296 }
 0x3d9   : > { %v1135_v45 = vadd.f32 %v1131_v22, %v1111_v27 }
 0x3db   : > { %v1157_v11 = vadd.f32 %v1155_v32, %v1135_v45 }
 0x3dd   : > { %v1177_v58 = vadd.f32 %v1175_v38, %v1157_v11 }
 0x3df   : > { %v1192_v51 = vpop.permute.xlu1 %1191  ;;  %v1252_v50 = vpop.permute.xlu0 %1251 }
 0x3e0   : > { %v1195_v33 = vsel %vm630_vm2, %v1190_v29, %v1192_v51  ;;  %v1196_v35 = vsel %vm630_vm2, %v1192_v51, %v1194_v42 }
 0x3e1   : > { %v1199_v59 = vadd.f32 %v1195_v33, %v1177_v58  ;;  %v1200_v34 = vadd.f32 %v1196_v35, %v1178_v55  ;;  %v1317_v32 = vpop.permute.xlu2 %1316 }
 0x3e3   : > { %v1219_v57 = vadd.f32 %v1217_v62, %v1199_v59  ;;  %v1220_v24 = vadd.f32 %v1218_v61, %v1200_v34 }
 0x3e5   : > { %v1239_v12 = vadd.f32 %v1237_v0, %v1219_v57  ;;  %v1240_v47 = vadd.f32 %v1238_v8, %v1220_v24 }
 0x3e7   : > { %v1254_v30 = vpop.permute.xlu1 %1253  ;;  %v1277_v1 = vpop.permute.xlu0 %1276 }
 0x3e8   : > { %v1257_v14 = vsel %vm695_vm6, %v1252_v50, %v1254_v30  ;;  %v1258_v40 = vsel %vm695_vm6, %v1254_v30, %v1256_v53  ;;  %v1279_v19 = vmul.f32 %v1277_v1, %v1273_v13  ;;  %v1280_v5 = vmul.f32 %v1277_v1, %v1274_v16 }
 0x3e9   : > { %v1261_v17 = vadd.f32 %v1257_v14, %v1239_v12  ;;  %v1262_v43 = vadd.f32 %v1258_v40, %v1240_v47 }
 0x3eb   : > { %v1281_v7 = vadd.f32 %v1279_v19, %v1261_v17  ;;  %v1282_v52 = vadd.f32 %v1280_v5, %v1262_v43 }
 0x3ef   : > { %v1286_v6 = vpop.permute.xlu1 %1285 }
 0x3f0   : > { %v1288_v20 = vadd.f32 %v1286_v6, %v1281_v7  ;;  %v1289_v10 = vadd.f32 %v1286_v6, %v1282_v52  ;;  %v1327_v25 = vpop.permute.xlu0 %1326 }
 0x3f2   : > { %v1292_v54 = vperm.slane %v1288_v20, 0  ;;  %v1293_v27 = vperm.slane %v1289_v10, 0  ;;  %v1313_v36 = vperm.slane %v1288_v20, 2  ;;  %v1314_v29 = vperm.slane %v1289_v10, 2 }
 0x3f3   : > { %v1303_v22 = vperm.slane %v1288_v20, 1  ;;  %v1304_v28 = vperm.slane %v1289_v10, 1  ;;  %v1323_v44 = vperm.slane %v1288_v20, 3  ;;  %v1324_v46 = vperm.slane %v1289_v10, 3 }
 0x3f4   : > { %v1299_v21 = vmul.f32 %v1297_v60, %v1292_v54  ;;  %v1300_v39 = vmul.f32 %v1297_v60, %v1293_v27  ;;  %v1319_v42 = vmul.f32 %v1317_v32, %v1313_v36  ;;  %v1320_v26 = vmul.f32 %v1317_v32, %v1314_v29 }
 0x3f5   : > { %v1329_v49 = vmul.f32 %v1327_v25, %v1323_v44  ;;  %v1330_v51 = vmul.f32 %v1327_v25, %v1324_v46 }
 0x3f8   : > { %v1307_v45 = vpop.permute.xlu1 %1306 }
 0x3f9   : > { %v1309_v23 = vmul.f32 %v1307_v45, %v1303_v22  ;;  %v1310_v11 = vmul.f32 %v1307_v45, %v1304_v28 }
 0x3fb   : > { %v1311_v38 = vadd.f32 %v1309_v23, %v1299_v21  ;;  %v1312_v56 = vadd.f32 %v1310_v11, %v1300_v39 }
 0x3fd   : > { %v1321_v58 = vadd.f32 %v1319_v42, %v1311_v38  ;;  %v1322_v55 = vadd.f32 %v1320_v26, %v1312_v56 }
 0x3ff   : > { %v1331_v50 = vadd.f32 %v1329_v49, %v1321_v58  ;;  %v1332_v37 = vadd.f32 %v1330_v51, %v1322_v55 }
 0x401   : > { %v1336_v48 = vpop.permute.xlu1 %1335 }
 0x402   : > { %v1338_v33 = vadd.f32 %v1336_v48, %v1331_v50  ;;  %v1339_v35 = vadd.f32 %v1336_v48, %v1332_v37 }
 0x404   : > { %v1340_v2 = vadd.f32 3.0, %v1338_v33  ;;  %v1341_v9 = vadd.f32 3.0, %v1339_v35 }
 0x406   : > { %v1342_v59 = vmax.f32 %v1340_v2, 0.0  ;;  %v1343_v34 = vmax.f32 %v1341_v9, 0.0 }
 0x408   : > { %v1344_v61 = vmin.f32 %v1342_v59, 6.0  ;;  %v1345_v62 = vmin.f32 %v1343_v34, 6.0 }
 0x40a   : > { %v1346_v63 = vmul.f32 %v1344_v61, %v1338_v33  ;;  %v1347_v15 = vmul.f32 %v1345_v62, %v1339_v35 }
 0x40c   : > { %v1348_v57 = vmul.f32 0.16666667, %v1346_v63  ;;  %v1349_v24 = vmul.f32 0.16666667, %v1347_v15 }
 0x40e   : > { %v1361_v53 = vrot.slane %v1349_v24, 7  ;;  %1375 = vst [vmem:[#allocation1] sm:$0xff] %v1348_v57 }
 0x40f   : > { %1376 = vst [vmem:[#allocation1 + $0x9] sm:$0xff] %v1349_v24 }
 0x410   : > { %v1362_v0 = vsel %vm490_vm0, %v1348_v57, %v1361_v53 }
 0x411   : > { %1479 = vst.msk [vmem:[%s1699_s18 + $0x1] ss:$8 sm:$0x3] %vm1704_vm5, %v1362_v0 }
 0x416   : > { %v1378_v8 = vld [vmem:[#allocation1 + $0x1] ss:$9 sm:$0xff] }
 0x417   : > { %1481 = vst.msk [vmem:[%s1699_s18 + $0x3] ss:$8 sm:$0x3] %vm1704_vm5, %v1378_v8 }
 0x418   : > { %1383 = vst [vmem:[#allocation1] sm:$0xff] %v1680_v3 }
 0x419   : > { %1384 = vst [vmem:[#allocation1 + $0x9] sm:$0xff] %v1682_v4 }
 0x420   : > { %v1386_v41 = vld [vmem:[#allocation1 + $0x2] ss:$9 sm:$0xff] }
 0x421   : > { %1482 = vst.msk [vmem:[%s1699_s18 + $0x4] ss:$8 sm:$0x3] %vm1704_vm5, %v1386_v41 }
 0x422   : > { %1391 = vst [vmem:[#allocation1] sm:$0xff] %v1348_v57 }
 0x423   : > { %1392 = vst [vmem:[#allocation1 + $0x9] sm:$0xff] %v1349_v24 }
 0x42a   : > { %v1394_v31 = vld [vmem:[#allocation1 + $0x2] ss:$9 sm:$0xff] }
 0x42b   : > { %1483 = vst.msk [vmem:[%s1699_s18 + $0x5] ss:$8 sm:$0x3] %vm1704_vm5, %v1394_v31 }
 0x42c   : > { %1399 = vst [vmem:[#allocation1] sm:$0xff] %v1680_v3 }
 0x42d   : > { %1400 = vst [vmem:[#allocation1 + $0x9] sm:$0xff] %v1682_v4 }
 0x434   : > { %v1402_v30 = vld [vmem:[#allocation1 + $0x3] ss:$9 sm:$0xff] }
 0x435   : > { %1484 = vst.msk [vmem:[%s1699_s18 + $0x6] ss:$8 sm:$0x3] %vm1704_vm5, %v1402_v30 }
 0x436   : > { %1407 = vst [vmem:[#allocation1] sm:$0xff] %v1348_v57 }
 0x437   : > { %1408 = vst [vmem:[#allocation1 + $0x9] sm:$0xff] %v1349_v24 }
 0x43e   : > { %v1410_v14 = vld [vmem:[#allocation1 + $0x3] ss:$9 sm:$0xff] }
 0x43f   : > { %1485 = vst.msk [vmem:[%s1699_s18 + $0x7] ss:$8 sm:$0x3] %vm1704_vm5, %v1410_v14 }
 0x440 PF: > { %s23_s25 = sadd.s32 1, %s1571_s25  }
 0x441   : > { %p20_p4 = scmp.ge.s32.totalorder %s23_s25, 4  }
 0x443   :  { %22 = sbr.rel (!%p20_p4) target bundleno = 1 (0x1), region = 115 }

</bundles_post_ra>
